<compile_context>
chip_gen: v7x
topology: tpu7x:2x2x1
jax: 0.10.0
libtpu: 0.0.40
codegen_flags: <defaults>
</compile_context>

<pallas_src>
import jax
import jax.numpy as jnp
from jax import lax
from jax.experimental import pallas as pl
from jax.experimental.pallas import tpu as pltpu


# ----------------------------------------------------------------------------
# Kernel: 3x3 "same" conv on one row tile of one image, NHWC, bf16 -> f32 acc.
# ----------------------------------------------------------------------------
def _conv3x3_rowtile_kernel(x_ref, w_ref, o_ref):
    # x_ref: (1, tile_h+2, W+2, Cin)   bf16  -- row tile incl. 1-row/1-col zero halo
    # w_ref: (3, 3, Cin, Cout)         bf16  -- full HWIO weights (resident in VMEM)
    # o_ref: (1, tile_h*W, Cout)       bf16  -- lane-dense (M, Cout) output slab
    tile_h = x_ref.shape[1] - 2
    w_sz = x_ref.shape[2] - 2
    cin = x_ref.shape[3]
    cout = o_ref.shape[2]

    acc = jnp.zeros((tile_h * w_sz, cout), dtype=jnp.float32)
    # 3x3 conv as 9 shifted (M, Cin) @ (Cin, Cout) MXU matmuls, f32 accumulation.
    for ky in range(3):
        for kx in range(3):
            patch = x_ref[0, ky:ky + tile_h, kx:kx + w_sz, :].reshape(
                tile_h * w_sz, cin)
            acc = acc + jnp.dot(patch, w_ref[ky, kx],
                                preferred_element_type=jnp.float32)

    # Store the accumulator directly as an (M, Cout) slab -- no in-kernel reshape.
    o_ref[0] = acc.astype(o_ref.dtype)


# ----------------------------------------------------------------------------
# Tile-size selection / VMEM budgeting
# ----------------------------------------------------------------------------
def _step_vmem_bytes(tile_h, W, cin, cout):
    """Rough per-grid-step VMEM working set (lane-padded, double-buffered I/O)."""
    lane = lambda c: -(-c // 128) * 128               # pad last dim to 128 lanes
    x_blk = (tile_h + 2) * (W + 2) * lane(cin) * 2    # bf16 input tile
    o_blk = tile_h * W * lane(cout) * 2               # bf16 output tile
    w_blk = 9 * cin * lane(cout) * 2                  # resident weights
    acc = tile_h * W * lane(cout) * 4                 # f32 accumulator
    return 2 * (x_blk + o_blk) + w_blk + acc          # in/out double-buffered


def _pick_tile_h(H, W, cin, cout, budget_bytes=6 * 2**20):
    """Largest divisor of H whose per-step working set fits the budget."""
    tile_h = 1
    for d in range(1, H + 1):
        if H % d == 0 and _step_vmem_bytes(d, W, cin, cout) <= budget_bytes:
            tile_h = d
    # Prefer >= 2 row tiles so a 2-TensorCore chip (v7x) always has parallel work.
    if tile_h == H and H % 2 == 0:
        tile_h = H // 2
    return tile_h


# ----------------------------------------------------------------------------
# Wrapper: Upsample.forward equivalent (NCHW in / NCHW out, PyTorch semantics)
# ----------------------------------------------------------------------------
def upsample_forward(x_nchw, w_oihw, *, tile_h=None, compute_dtype=jnp.bfloat16):
    """x_nchw: (N, n_feat, H, W); w_oihw: (2*n_feat, n_feat, 3, 3) (PyTorch OIHW).

    Returns (N, n_feat // 2, 2*H, 2*W) in x's dtype (bf16 compute, f32 accumulate).
    """
    N, cin, H, W = x_nchw.shape
    cout = w_oihw.shape[0]
    out_dtype = x_nchw.dtype

    if tile_h is None:
        tile_h = _pick_tile_h(H, W, cin, cout)
    assert H % tile_h == 0, (H, tile_h)
    n_tiles = H // tile_h

    # Layout plumbing (XLA): OIHW -> HWIO, NCHW -> NHWC, cast operands to bf16.
    w_hwio = jnp.transpose(w_oihw, (2, 3, 1, 0)).astype(compute_dtype)   # (3,3,Ci,Co)
    x_nhwc = jnp.transpose(x_nchw, (0, 2, 3, 1)).astype(compute_dtype)   # (N,H,W,Ci)

    # Overlapping row tiles with a 1-pixel zero halo (pad fused into the same copy).
    x_pad = jnp.pad(x_nhwc, ((0, 0), (1, 1), (1, 1), (0, 0)))
    tiles = jnp.stack(
        [x_pad[:, t * tile_h:t * tile_h + tile_h + 2] for t in range(n_tiles)],
        axis=1)                                     # (N, n_tiles, th+2, W+2, Cin)
    tiles = tiles.reshape(N * n_tiles, tile_h + 2, W + 2, cin)

    est = _step_vmem_bytes(tile_h, W, cin, cout)
    vmem_limit = int(min(56 * 2**20, max(32 * 2**20, 3 * est)))

    y = pl.pallas_call(
        _conv3x3_rowtile_kernel,
        out_shape=jax.ShapeDtypeStruct((N * n_tiles, tile_h * W, cout),
                                       compute_dtype),
        grid_spec=pltpu.PrefetchScalarGridSpec(
            num_scalar_prefetch=0,
            grid=(N * n_tiles,),
            in_specs=[
                pl.BlockSpec((1, tile_h + 2, W + 2, cin),
                             lambda i: (i, 0, 0, 0)),
                pl.BlockSpec((3, 3, cin, cout),
                             lambda i: (0, 0, 0, 0)),     # weights stay resident
            ],
            out_specs=pl.BlockSpec((1, tile_h * W, cout), lambda i: (i, 0, 0)),
        ),
        compiler_params=pltpu.CompilerParams(
            dimension_semantics=("parallel",),
            vmem_limit_bytes=vmem_limit),
    )(tiles, w_hwio)

    # (N*n_tiles, tile_h*W, Cout) -> (N, H, W, Cout): row tiles are H-major.
    y = y.reshape(N, H, W, cout)

    # PixelShuffle(2) in NHWC: channel c*4 + 2*dy + dx -> pixel (2h+dy, 2w+dx),
    # then a single NHWC -> NCHW transpose and one cast back to the input dtype.
    c_out = cout // 4
    y = y.reshape(N, H, W, c_out, 2, 2)
    y = jnp.transpose(y, (0, 1, 4, 2, 5, 3))        # (N, H, 2, W, 2, C)
    y = y.reshape(N, 2 * H, 2 * W, c_out)
    y = jnp.transpose(y, (0, 3, 1, 2))              # NCHW
    return y.astype(out_dtype)


# ----------------------------------------------------------------------------
# Demo / self-check
# ----------------------------------------------------------------------------
if __name__ == "__main__":
    key = jax.random.PRNGKey(0)
    k_x, k_w = jax.random.split(key)

    # Small shapes consistent with the module: batch=2, n_feat=4, spatial=16.
    N, n_feat, H, W = 2, 4, 16, 16
    x = jax.random.normal(k_x, (N, n_feat, H, W), dtype=jnp.float32)
    w = 0.1 * jax.random.normal(k_w, (2 * n_feat, n_feat, 3, 3), dtype=jnp.float32)

    fwd = jax.jit(upsample_forward)
    out = jax.block_until_ready(fwd(x, w))
    assert out.shape == (N, n_feat // 2, 2 * H, 2 * W), out.shape

    # Reference: XLA f32 conv + the same PixelShuffle(2), in NCHW.
    y_ref = lax.conv_general_dilated(
        x, w, window_strides=(1, 1), padding="SAME",
        dimension_numbers=("NCHW", "OIHW", "NCHW"))
    Nr, Crr, Hr, Wr = y_ref.shape
    ref = y_ref.reshape(Nr, Crr // 4, 2, 2, Hr, Wr)
    ref = jnp.transpose(ref, (0, 1, 4, 2, 5, 3)).reshape(Nr, Crr // 4, 2 * Hr, 2 * Wr)

    # bf16 operands / bf16 activation store => compare within bf16 tolerance.
    assert jnp.allclose(out, ref, atol=5e-2, rtol=5e-2), \
        float(jnp.max(jnp.abs(out - ref)))
    print("KERNEL_OK")
</pallas_src>

<mosaic_0001>
module attributes {stable_mosaic.version = 11 : i64} {
  func.func @_conv3x3_rowtile_kernel(%arg0: i32, %arg1: memref<1x10x18x4xbf16, #tpu.memory_space<vmem>>, %arg2: memref<3x3x4x8xbf16, #tpu.memory_space<vmem>>, %arg3: memref<1x128x8xbf16, #tpu.memory_space<vmem>>) attributes {dimension_semantics = [#tpu.dimension_semantics<parallel>], iteration_bounds = array<i64: 4>, scalar_prefetch = 0 : i64, scratch_operands = 0 : i64, tpu.core_type = #tpu.core_type<tc>, window_params = [{transform_indices = @transform_0, window_bounds = array<i64: 1, 10, 18, 4>}, {pipeline_mode = #tpu.pipeline_mode<synchronous>, transform_indices = @transform_1, window_bounds = array<i64: 3, 3, 4, 8>}, {transform_indices = @transform_2, window_bounds = array<i64: 1, 128, 8>}]} {
    %cst = arith.constant 0.000000e+00 : f32
    %0 = vector.broadcast %cst : f32 to vector<128x8xf32>
    %c0 = arith.constant 0 : index
    %c0_0 = arith.constant 0 : index
    %c0_1 = arith.constant 0 : index
    %c0_2 = arith.constant 0 : index
    %1 = vector.load %arg1[%c0, %c0_0, %c0_1, %c0_2] : memref<1x10x18x4xbf16, #tpu.memory_space<vmem>>, vector<1x8x16x4xbf16>
    %2 = vector.shape_cast %1 : vector<1x8x16x4xbf16> to vector<8x16x4xbf16>
    %3 = vector.shape_cast %2 : vector<8x16x4xbf16> to vector<128x4xbf16>
    %c0_3 = arith.constant 0 : index
    %c0_4 = arith.constant 0 : index
    %c0_5 = arith.constant 0 : index
    %c0_6 = arith.constant 0 : index
    %4 = vector.load %arg2[%c0_3, %c0_4, %c0_5, %c0_6] : memref<3x3x4x8xbf16, #tpu.memory_space<vmem>>, vector<1x1x4x8xbf16>
    %5 = vector.shape_cast %4 : vector<1x1x4x8xbf16> to vector<4x8xbf16>
    %cst_7 = arith.constant dense<0.000000e+00> : vector<128x8xf32>
    %6 = tpu.matmul %3, %5, %cst_7 {dimension_numbers = #tpu.dot_dimension_numbers<[1], [0], [0], [1], [0, 0, 1, 1], [], []>} : vector<128x4xbf16>, vector<4x8xbf16>, vector<128x8xf32> -> vector<128x8xf32>
    %7 = arith.addf %0, %6 : vector<128x8xf32>
    %c0_8 = arith.constant 0 : index
    %c0_9 = arith.constant 0 : index
    %c1 = arith.constant 1 : index
    %c0_10 = arith.constant 0 : index
    %8 = vector.load %arg1[%c0_8, %c0_9, %c1, %c0_10] : memref<1x10x18x4xbf16, #tpu.memory_space<vmem>>, vector<1x8x16x4xbf16>
    %9 = vector.shape_cast %8 : vector<1x8x16x4xbf16> to vector<8x16x4xbf16>
    %10 = vector.shape_cast %9 : vector<8x16x4xbf16> to vector<128x4xbf16>
    %c0_11 = arith.constant 0 : index
    %c1_12 = arith.constant 1 : index
    %c0_13 = arith.constant 0 : index
    %c0_14 = arith.constant 0 : index
    %11 = vector.load %arg2[%c0_11, %c1_12, %c0_13, %c0_14] : memref<3x3x4x8xbf16, #tpu.memory_space<vmem>>, vector<1x1x4x8xbf16>
    %12 = vector.shape_cast %11 : vector<1x1x4x8xbf16> to vector<4x8xbf16>
    %cst_15 = arith.constant dense<0.000000e+00> : vector<128x8xf32>
    %13 = tpu.matmul %10, %12, %cst_15 {dimension_numbers = #tpu.dot_dimension_numbers<[1], [0], [0], [1], [0, 0, 1, 1], [], []>} : vector<128x4xbf16>, vector<4x8xbf16>, vector<128x8xf32> -> vector<128x8xf32>
    %14 = arith.addf %7, %13 : vector<128x8xf32>
    %c0_16 = arith.constant 0 : index
    %c0_17 = arith.constant 0 : index
    %c2 = arith.constant 2 : index
    %c0_18 = arith.constant 0 : index
    %15 = vector.load %arg1[%c0_16, %c0_17, %c2, %c0_18] : memref<1x10x18x4xbf16, #tpu.memory_space<vmem>>, vector<1x8x16x4xbf16>
    %16 = vector.shape_cast %15 : vector<1x8x16x4xbf16> to vector<8x16x4xbf16>
    %17 = vector.shape_cast %16 : vector<8x16x4xbf16> to vector<128x4xbf16>
    %c0_19 = arith.constant 0 : index
    %c2_20 = arith.constant 2 : index
    %c0_21 = arith.constant 0 : index
    %c0_22 = arith.constant 0 : index
    %18 = vector.load %arg2[%c0_19, %c2_20, %c0_21, %c0_22] : memref<3x3x4x8xbf16, #tpu.memory_space<vmem>>, vector<1x1x4x8xbf16>
    %19 = vector.shape_cast %18 : vector<1x1x4x8xbf16> to vector<4x8xbf16>
    %cst_23 = arith.constant dense<0.000000e+00> : vector<128x8xf32>
    %20 = tpu.matmul %17, %19, %cst_23 {dimension_numbers = #tpu.dot_dimension_numbers<[1], [0], [0], [1], [0, 0, 1, 1], [], []>} : vector<128x4xbf16>, vector<4x8xbf16>, vector<128x8xf32> -> vector<128x8xf32>
    %21 = arith.addf %14, %20 : vector<128x8xf32>
    %c0_24 = arith.constant 0 : index
    %c1_25 = arith.constant 1 : index
    %c0_26 = arith.constant 0 : index
    %c0_27 = arith.constant 0 : index
    %22 = vector.load %arg1[%c0_24, %c1_25, %c0_26, %c0_27] : memref<1x10x18x4xbf16, #tpu.memory_space<vmem>>, vector<1x8x16x4xbf16>
    %23 = vector.shape_cast %22 : vector<1x8x16x4xbf16> to vector<8x16x4xbf16>
    %24 = vector.shape_cast %23 : vector<8x16x4xbf16> to vector<128x4xbf16>
    %c1_28 = arith.constant 1 : index
    %c0_29 = arith.constant 0 : index
    %c0_30 = arith.constant 0 : index
    %c0_31 = arith.constant 0 : index
    %25 = vector.load %arg2[%c1_28, %c0_29, %c0_30, %c0_31] : memref<3x3x4x8xbf16, #tpu.memory_space<vmem>>, vector<1x1x4x8xbf16>
    %26 = vector.shape_cast %25 : vector<1x1x4x8xbf16> to vector<4x8xbf16>
    %cst_32 = arith.constant dense<0.000000e+00> : vector<128x8xf32>
    %27 = tpu.matmul %24, %26, %cst_32 {dimension_numbers = #tpu.dot_dimension_numbers<[1], [0], [0], [1], [0, 0, 1, 1], [], []>} : vector<128x4xbf16>, vector<4x8xbf16>, vector<128x8xf32> -> vector<128x8xf32>
    %28 = arith.addf %21, %27 : vector<128x8xf32>
    %c0_33 = arith.constant 0 : index
    %c1_34 = arith.constant 1 : index
    %c1_35 = arith.constant 1 : index
    %c0_36 = arith.constant 0 : index
    %29 = vector.load %arg1[%c0_33, %c1_34, %c1_35, %c0_36] : memref<1x10x18x4xbf16, #tpu.memory_space<vmem>>, vector<1x8x16x4xbf16>
    %30 = vector.shape_cast %29 : vector<1x8x16x4xbf16> to vector<8x16x4xbf16>
    %31 = vector.shape_cast %30 : vector<8x16x4xbf16> to vector<128x4xbf16>
    %c1_37 = arith.constant 1 : index
    %c1_38 = arith.constant 1 : index
    %c0_39 = arith.constant 0 : index
    %c0_40 = arith.constant 0 : index
    %32 = vector.load %arg2[%c1_37, %c1_38, %c0_39, %c0_40] : memref<3x3x4x8xbf16, #tpu.memory_space<vmem>>, vector<1x1x4x8xbf16>
    %33 = vector.shape_cast %32 : vector<1x1x4x8xbf16> to vector<4x8xbf16>
    %cst_41 = arith.constant dense<0.000000e+00> : vector<128x8xf32>
    %34 = tpu.matmul %31, %33, %cst_41 {dimension_numbers = #tpu.dot_dimension_numbers<[1], [0], [0], [1], [0, 0, 1, 1], [], []>} : vector<128x4xbf16>, vector<4x8xbf16>, vector<128x8xf32> -> vector<128x8xf32>
    %35 = arith.addf %28, %34 : vector<128x8xf32>
    %c0_42 = arith.constant 0 : index
    %c1_43 = arith.constant 1 : index
    %c2_44 = arith.constant 2 : index
    %c0_45 = arith.constant 0 : index
    %36 = vector.load %arg1[%c0_42, %c1_43, %c2_44, %c0_45] : memref<1x10x18x4xbf16, #tpu.memory_space<vmem>>, vector<1x8x16x4xbf16>
    %37 = vector.shape_cast %36 : vector<1x8x16x4xbf16> to vector<8x16x4xbf16>
    %38 = vector.shape_cast %37 : vector<8x16x4xbf16> to vector<128x4xbf16>
    %c1_46 = arith.constant 1 : index
    %c2_47 = arith.constant 2 : index
    %c0_48 = arith.constant 0 : index
    %c0_49 = arith.constant 0 : index
    %39 = vector.load %arg2[%c1_46, %c2_47, %c0_48, %c0_49] : memref<3x3x4x8xbf16, #tpu.memory_space<vmem>>, vector<1x1x4x8xbf16>
    %40 = vector.shape_cast %39 : vector<1x1x4x8xbf16> to vector<4x8xbf16>
    %cst_50 = arith.constant dense<0.000000e+00> : vector<128x8xf32>
    %41 = tpu.matmul %38, %40, %cst_50 {dimension_numbers = #tpu.dot_dimension_numbers<[1], [0], [0], [1], [0, 0, 1, 1], [], []>} : vector<128x4xbf16>, vector<4x8xbf16>, vector<128x8xf32> -> vector<128x8xf32>
    %42 = arith.addf %35, %41 : vector<128x8xf32>
    %c0_51 = arith.constant 0 : index
    %c2_52 = arith.constant 2 : index
    %c0_53 = arith.constant 0 : index
    %c0_54 = arith.constant 0 : index
    %43 = vector.load %arg1[%c0_51, %c2_52, %c0_53, %c0_54] : memref<1x10x18x4xbf16, #tpu.memory_space<vmem>>, vector<1x8x16x4xbf16>
    %44 = vector.shape_cast %43 : vector<1x8x16x4xbf16> to vector<8x16x4xbf16>
    %45 = vector.shape_cast %44 : vector<8x16x4xbf16> to vector<128x4xbf16>
    %c2_55 = arith.constant 2 : index
    %c0_56 = arith.constant 0 : index
    %c0_57 = arith.constant 0 : index
    %c0_58 = arith.constant 0 : index
    %46 = vector.load %arg2[%c2_55, %c0_56, %c0_57, %c0_58] : memref<3x3x4x8xbf16, #tpu.memory_space<vmem>>, vector<1x1x4x8xbf16>
    %47 = vector.shape_cast %46 : vector<1x1x4x8xbf16> to vector<4x8xbf16>
    %cst_59 = arith.constant dense<0.000000e+00> : vector<128x8xf32>
    %48 = tpu.matmul %45, %47, %cst_59 {dimension_numbers = #tpu.dot_dimension_numbers<[1], [0], [0], [1], [0, 0, 1, 1], [], []>} : vector<128x4xbf16>, vector<4x8xbf16>, vector<128x8xf32> -> vector<128x8xf32>
    %49 = arith.addf %42, %48 : vector<128x8xf32>
    %c0_60 = arith.constant 0 : index
    %c2_61 = arith.constant 2 : index
    %c1_62 = arith.constant 1 : index
    %c0_63 = arith.constant 0 : index
    %50 = vector.load %arg1[%c0_60, %c2_61, %c1_62, %c0_63] : memref<1x10x18x4xbf16, #tpu.memory_space<vmem>>, vector<1x8x16x4xbf16>
    %51 = vector.shape_cast %50 : vector<1x8x16x4xbf16> to vector<8x16x4xbf16>
    %52 = vector.shape_cast %51 : vector<8x16x4xbf16> to vector<128x4xbf16>
    %c2_64 = arith.constant 2 : index
    %c1_65 = arith.constant 1 : index
    %c0_66 = arith.constant 0 : index
    %c0_67 = arith.constant 0 : index
    %53 = vector.load %arg2[%c2_64, %c1_65, %c0_66, %c0_67] : memref<3x3x4x8xbf16, #tpu.memory_space<vmem>>, vector<1x1x4x8xbf16>
    %54 = vector.shape_cast %53 : vector<1x1x4x8xbf16> to vector<4x8xbf16>
    %cst_68 = arith.constant dense<0.000000e+00> : vector<128x8xf32>
    %55 = tpu.matmul %52, %54, %cst_68 {dimension_numbers = #tpu.dot_dimension_numbers<[1], [0], [0], [1], [0, 0, 1, 1], [], []>} : vector<128x4xbf16>, vector<4x8xbf16>, vector<128x8xf32> -> vector<128x8xf32>
    %56 = arith.addf %49, %55 : vector<128x8xf32>
    %c0_69 = arith.constant 0 : index
    %c2_70 = arith.constant 2 : index
    %c2_71 = arith.constant 2 : index
    %c0_72 = arith.constant 0 : index
    %57 = vector.load %arg1[%c0_69, %c2_70, %c2_71, %c0_72] : memref<1x10x18x4xbf16, #tpu.memory_space<vmem>>, vector<1x8x16x4xbf16>
    %58 = vector.shape_cast %57 : vector<1x8x16x4xbf16> to vector<8x16x4xbf16>
    %59 = vector.shape_cast %58 : vector<8x16x4xbf16> to vector<128x4xbf16>
    %c2_73 = arith.constant 2 : index
    %c2_74 = arith.constant 2 : index
    %c0_75 = arith.constant 0 : index
    %c0_76 = arith.constant 0 : index
    %60 = vector.load %arg2[%c2_73, %c2_74, %c0_75, %c0_76] : memref<3x3x4x8xbf16, #tpu.memory_space<vmem>>, vector<1x1x4x8xbf16>
    %61 = vector.shape_cast %60 : vector<1x1x4x8xbf16> to vector<4x8xbf16>
    %cst_77 = arith.constant dense<0.000000e+00> : vector<128x8xf32>
    %62 = tpu.matmul %59, %61, %cst_77 {dimension_numbers = #tpu.dot_dimension_numbers<[1], [0], [0], [1], [0, 0, 1, 1], [], []>} : vector<128x4xbf16>, vector<4x8xbf16>, vector<128x8xf32> -> vector<128x8xf32>
    %63 = arith.addf %56, %62 : vector<128x8xf32>
    %64 = arith.truncf %63 : vector<128x8xf32> to vector<128x8xbf16>
    %c0_78 = arith.constant 0 : index
    %c0_79 = arith.constant 0 : index
    %c0_80 = arith.constant 0 : index
    %65 = vector.load %arg3[%c0_78, %c0_79, %c0_80] : memref<1x128x8xbf16, #tpu.memory_space<vmem>>, vector<1x128x8xbf16>
    %66 = vector.shape_cast %65 : vector<1x128x8xbf16> to vector<128x8xbf16>
    %67 = vector.shape_cast %64 : vector<128x8xbf16> to vector<1x128x8xbf16>
    tpu.vector_store %arg3[%c0_78, %c0_79, %c0_80], %67 {strides = array<i32>} : memref<1x128x8xbf16, #tpu.memory_space<vmem>>, vector<1x128x8xbf16>,
    return
  }
  func.func @transform_0(%arg0: i32) -> (i32, i32, i32, i32) {
    %c0_i32 = arith.constant 0 : i32
    %c0_i32_0 = arith.constant 0 : i32
    %c0_i32_1 = arith.constant 0 : i32
    %c0_i32_2 = arith.constant 0 : i32
    return %arg0, %c0_i32, %c0_i32_0, %c0_i32_1 : i32, i32, i32, i32
  }
  func.func @transform_1(%arg0: i32) -> (i32, i32, i32, i32) {
    %c0_i32 = arith.constant 0 : i32
    %c0_i32_0 = arith.constant 0 : i32
    %c0_i32_1 = arith.constant 0 : i32
    %c0_i32_2 = arith.constant 0 : i32
    %c0_i32_3 = arith.constant 0 : i32
    return %c0_i32, %c0_i32_0, %c0_i32_1, %c0_i32_2 : i32, i32, i32, i32
  }
  func.func @transform_2(%arg0: i32) -> (i32, i32, i32) {
    %c0_i32 = arith.constant 0 : i32
    %c0_i32_0 = arith.constant 0 : i32
    %c0_i32_1 = arith.constant 0 : i32
    return %arg0, %c0_i32, %c0_i32_0 : i32, i32, i32
  }
}

</mosaic_0001>

<bundles_post_ra>
// kernel: upsample_forward.1
= control target key start
LH: loop header
LB: loop body
LE: loop exit
PB: predicated region body
PF: predicated region fallthrough
CT: control target
= control target key end

     0   :  { %s3491_s9 = smov 0   ;;  %s4403_s0 = inlined_call_operand.vmem [shape: bf16[4,10,18,4], index: 0, kind: input, shape index: {}]   ;;  %s4404_s1 = inlined_call_operand.vmem [shape: bf16[3,3,4,8], index: 1, kind: input, shape index: {}]   ;;  %s4405_s2 = inlined_call_operand.vmem [shape: bf16[4,128,8], index: 2, kind: output, shape index: {}]  }
   0x1 LB: > { %s2736_s10 = sadd.s32 4294967295, %s3474_s9   ;;  %p2740_p0 = scmp.ge.s32.totalorder %s3474_s9, 1  ;;  %s3474_s9 = sphi %s3491_s9, %s12_s9  }
   0x2   : > { %p112_p1 = scmp.lt.s32.totalorder %s3474_s9, 5 }
   0x4   : > { %p113_p2 = pnand %p2740_p0, %p112_p1 }
   0x6   : > { %116 = sbr.rel (%p113_p2) target bundleno = 415 (0x19f), region = 28 }
   0xd   : > { %v2744_v0 = vld [vmem:[%s4404_s1 + $0x2] sm:$0x3]  ;;  %vm416_vm0 = vcmask 1041408   ;;  %v2859_v1 = vld [vmem:[%s4404_s1 + $0x8] sm:$0x3]  ;;  %p134_p3 = scmp.lt.s32.totalorder %s2736_s10, 3 }
   0xe   : > { %3424 = vmatprep.subr.msk.bf16.mxu1 %vm416_vm0, %v2744_v0  ;;  %3428 = vmatprep.subr.msk.bf16.mxu0 %vm416_vm0, %v2859_v1  ;;  %v418_v2 = vsel %vm416_vm0, %v2744_v0, 0  ;;  %v3509_v3 = vsel %vm416_vm0, %v2859_v1, 0  ;;  %v161_v4 = vld [vmem:[%s4404_s1] sm:$0x3]  ;;  %v2892_v5 = vld [vmem:[%s4404_s1 + $0xa] sm:$0x3] }
   0xf   : > { %3133 = vmatpush3.bf16.msra.mxu1 %v418_v2  ;;  %3205 = vmatpush3.bf16.msra.mxu0 %v3509_v3  ;;  %s4429_s10 = smov (!%p134_p3, %s2736_s10), 3  ;;  %vm170_vm1 = vsmask.f32 3328  ;;  %vm171_vm2 = vsmask.f32 7440  ;;  %vm391_vm3 = vcmask 31744  }
  0x10   : > { %3425 = vmatprep.subr.msk.bf16.mxu1 %vm416_vm0, %v161_v4  ;;  %3430 = vmatprep.subr.msk.bf16.mxu0 %vm416_vm0, %v2892_v5  ;;  %s3434_s19 = smul.u32 120, %s4429_s10  ;;  %v3550_v17 = vsel %vm416_vm0, %v161_v4, 0  ;;  %v3556_v26 = vld [vmem:[%s4404_s1 + $0xc] sm:$0x3]  ;;  %vm3565_vm4 = vmor %vm170_vm1, %vm171_vm2  ;;  %v3573_v37 = vsel %vm416_vm0, %v2892_v5, 0  ;;  %vm705_vm5 = vcmask 1042432  }
  0x11   : > { %v3577_v41 = vsel %vm416_vm0, %v3556_v26, 0  ;;  %vm706_vm6 = vcmask 1046532   ;;  %s3034_s7 = sshll.u32 %s4429_s10, 6  ;;  %vm2664_vm8 = vcmask 60416  }
  0x12   : > { %s3526_s22 = scalar_lea.vmem %s4403_s0, %s3434_s19  ;;  %vm3720_vm7 = vmor %vm705_vm5, %vm706_vm6  ;;  %s4366_s12 = scalar_lea.vmem %s4405_s2, %s3034_s7 }
  0x13   : > { %v3529_v6 = vld [vmem:[%s3526_s22] sm:$0xf]  ;;  %v3532_v7 = vld [vmem:[%s3526_s22 + $0x4] sm:$0xf]  ;;  %v3535_v8 = vld [vmem:[%s3526_s22 + $0x8] sm:$0x1] }
  0x14   : > { %v174_v9 = vshrl.u32 %v3529_v6, 16  ;;  %v177_v10 = vshll.u32 %v3529_v6, 16  ;;  %v183_v11 = vshll.u32 %v3532_v7, 16  ;;  %v187_v12 = vshrl.u32 %v3532_v7, 16  ;;  %v2835_v13 = vld [vmem:[%s3526_s22 + $0xc] sm:$0xf] }
  0x15   : > { %v193_v14 = vshll.u32 %v3535_v8, 16  ;;  %v3544_v15 = vld [vmem:[%s3526_s22 + $0x10] sm:$0xf]  ;;  %v3547_v16 = vld [vmem:[%s3526_s22 + $0x14] sm:$0x1]  ;;  %v1154_v23 = vshrl.u32 %v2835_v13, 16 }
  0x16   : > { %v176_v18 = vrot.slane %v174_v9, 4  ;;  %v179_v19 = vrot.slane %v177_v10, 5  ;;  %v185_v20 = vrot.slane %v183_v11, 5  ;;  %v189_v21 = vrot.slane %v187_v12, 4  ;;  %v3561_v31 = vld [vmem:[%s3526_s22 + $0xc] sm:$0xf] }
  0x17   : > { %v195_v22 = vrot.slane %v193_v14, 5  ;;  %v1157_v24 = vshll.u32 %v2835_v13, 16  ;;  %v1163_v25 = vshll.u32 %v3544_v15, 16  ;;  %v1167_v29 = vshrl.u32 %v3544_v15, 16  ;;  %v3570_v36 = vld [vmem:[%s3526_s22 + $0x10] sm:$0xf] }
  0x18   : > { %v180_v27 = vor.u32 %v179_v19, %v176_v18  ;;  %v190_v28 = vor.u32 %v189_v21, %v185_v20  ;;  %v1173_v30 = vshll.u32 %v3547_v16, 16  ;;  %v1156_v33 = vrot.slane %v1154_v23, 4  ;;  %v3580_v44 = vld [vmem:[%s3526_s22 + $0x14] sm:$0x1]  ;;  %v2838_v55 = vld [vmem:[%s3526_s22 + $0x18] sm:$0xf] }
  0x19   : > { %v1159_v34 = vrot.slane %v1157_v24, 5  ;;  %v1165_v35 = vrot.slane %v1163_v25, 5  ;;  %v1169_v40 = vrot.slane %v1167_v29, 4  ;;  %v198_v45 = vshrl.u32 %v3561_v31, 16  ;;  %v3593_v60 = vld [vmem:[%s3526_s22 + $0x1c] sm:$0xf] }
  0x1a   : > { %v181_v38 = vrot.slane %v180_v27, 4  ;;  %v191_v39 = vrot.slane %v190_v28, 4  ;;  %v1175_v43 = vrot.slane %v1173_v30, 5  ;;  %v201_v46 = vshll.u32 %v3561_v31, 16  ;;  %v3601_v1 = vld [vmem:[%s3526_s22 + $0x20] sm:$0x1] }
  0x1b   : > { %v1160_v42 = vor.u32 %v1159_v34, %v1156_v33  ;;  %v1170_v49 = vor.u32 %v1169_v40, %v1165_v35  ;;  %v207_v50 = vshll.u32 %v3570_v36, 16  ;;  %v200_v53 = vrot.slane %v198_v45, 4  ;;  %v3609_v21 = vld [vmem:[%s3526_s22 + $0x18] sm:$0xf]  ;;  %v3616_v27 = vld [vmem:[%s3526_s22 + $0x1c] sm:$0xf] }
  0x1c   : > { %v186_v47 = vsel %vm3565_vm4, %v181_v38, %v185_v20  ;;  %v196_v48 = vsel %vm3565_vm4, %v191_v39, %v195_v22  ;;  %v203_v54 = vrot.slane %v201_v46, 5  ;;  %v211_v58 = vshrl.u32 %v3570_v36, 16  ;;  %v3624_v38 = vld [vmem:[%s3526_s22 + $0x20] sm:$0x1] }
  0x1d   : > { %v2745_v51 = vcombine.low %v186_v47, %v196_v48  ;;  %v1161_v52 = vrot.slane %v1160_v42, 4  ;;  %v1171_v56 = vrot.slane %v1170_v49, 4  ;;  %v209_v57 = vrot.slane %v207_v50, 5  ;;  %v2841_v47 = vld [vmem:[%s3526_s22 + $0x24] sm:$0xf] }
  0x1e   : > { %v217_v59 = vshll.u32 %v3580_v44, 16  ;;  %v1545_v62 = vrot.slane %v3544_v15, 5  ;;  %v1548_v63 = vrot.slane %v3547_v16, 5  ;;  %v204_v0 = vor.u32 %v203_v54, %v200_v53 }
  0x1f   : > { %3134 = vmatprep.mubr.msk.bf16.mxu1 %vm391_vm3, %v2745_v51  ;;  %v1166_v61 = vsel %vm3565_vm4, %v1161_v52, %v1165_v35  ;;  %v1176_v2 = vsel %vm3565_vm4, %v1171_v56, %v1175_v43  ;;  %v213_v4 = vrot.slane %v211_v58, 4  ;;  %v1178_v9 = vshrl.u32 %v2838_v55, 16  ;;  %v3634_v52 = vld [vmem:[%s3526_s22 + $0x28] sm:$0xf] }
  0x20   : > { %v219_v5 = vrot.slane %v217_v59, 5  ;;  %v2860_v10 = vcombine.low %v1166_v61, %v1176_v2  ;;  %v205_v11 = vrot.slane %v204_v0, 4  ;;  %v1181_v12 = vshll.u32 %v2838_v55, 16  ;;  %v3646_v61 = vld [vmem:[%s3526_s22 + $0x2c] sm:$0x1] }
  0x21   : > { %v1187_v13 = vshll.u32 %v3593_v60, 16  ;;  %v214_v14 = vor.u32 %v213_v4, %v209_v57  ;;  %v1180_v18 = vrot.slane %v1178_v9, 4  ;;  %v1191_v19 = vshrl.u32 %v3593_v60, 16 }
  0x22   : > { %v1197_v20 = vshll.u32 %v3601_v1, 16  ;;  %3206 = vmatprep.mubr.msk.bf16.mxu0 %vm391_vm3, %v2860_v10  ;;  %v210_v22 = vsel %vm3565_vm4, %v205_v11, %v209_v57  ;;  %v1183_v23 = vrot.slane %v1181_v12, 5  ;;  %v1552_v25 = vrot.slane %v3593_v60, 5  ;;  %v3640_v57 = vld [vmem:[%s4404_s1 + $0x4] sm:$0x3] }
  0x23   : > { %v1189_v24 = vrot.slane %v1187_v13, 5  ;;  %v215_v28 = vrot.slane %v214_v14, 4  ;;  %v1193_v29 = vrot.slane %v1191_v19, 4  ;;  %v1555_v33 = vrot.slane %v3601_v1, 5  ;;  %v3653_v11 = vld [vmem:[%s3526_s22 + $0x24] sm:$0xf] }
  0x24   : > { %v1199_v30 = vrot.slane %v1197_v20, 5  ;;  %v1184_v34 = vor.u32 %v1183_v23, %v1180_v18  ;;  %v3621_v35 = vrot.slane %v1552_v25, 4  ;;  %v222_v39 = vshrl.u32 %v3609_v21, 16  ;;  %v3656_v19 = vld [vmem:[%s3526_s22 + $0x28] sm:$0xf] }
  0x25   : > { %v225_v40 = vshll.u32 %v3609_v21, 16  ;;  %v220_v42 = vsel %vm3565_vm4, %v215_v28, %v219_v5  ;;  %v1194_v43 = vor.u32 %v1193_v29, %v1189_v24  ;;  %v231_v45 = vshll.u32 %v3616_v27, 16  ;;  %v3666_v29 = vld [vmem:[%s3526_s22 + $0x2c] sm:$0x1] }
  0x26   : > { %v235_v46 = vshrl.u32 %v3616_v27, 16  ;;  %v2746_v48 = vcombine.low %v210_v22, %v220_v42  ;;  %v1185_v49 = vrot.slane %v1184_v34, 4  ;;  %v224_v50 = vrot.slane %v222_v39, 4 }
  0x27   : > { %v227_v51 = vrot.slane %v225_v40, 5  ;;  %v1195_v53 = vrot.slane %v1194_v43, 4  ;;  %v233_v54 = vrot.slane %v231_v45, 5  ;;  %v241_v56 = vshll.u32 %v3624_v38, 16  ;;  %v2844_v45 = vld [vmem:[%s3526_s22 + $0x30] sm:$0xf] }
  0x28   : > { %v237_v55 = vrot.slane %v235_v46, 4  ;;  %3135 = vmatmul.mubr.msk.bf16.vlgmr.msra.gmra.mrb[0].mxu1 %vm391_vm3, %v2746_v48  ;;  %v1190_v58 = vsel %vm3565_vm4, %v1185_v49, %v1189_v24  ;;  %v1202_v0 = vshrl.u32 %v2841_v47, 16  ;;  %v1205_v2 = vshll.u32 %v2841_v47, 16 }
  0x29   : > { %v228_v59 = vor.u32 %v227_v51, %v224_v50  ;;  %3151 = vmatpush3.bf16.msra.mxu1 %v3550_v17  ;;  %v1200_v4 = vsel %vm3565_vm4, %v1195_v53, %v1199_v30  ;;  %v243_v9 = vrot.slane %v241_v56, 5  ;;  %v1211_v10 = vshll.u32 %v3634_v52, 16  ;;  %v3676_v50 = vld [vmem:[%s3526_s22 + $0x34] sm:$0xf] }
  0x2a   : > { %v238_v5 = vor.u32 %v237_v55, %v233_v54  ;;  %v2861_v12 = vcombine.low %v1190_v58, %v1200_v4  ;;  %v1204_v14 = vrot.slane %v1202_v0, 4  ;;  %v1207_v18 = vrot.slane %v1205_v2, 5  ;;  %3426 = vmatprep.subr.msk.bf16.mxu1 %vm416_vm0, %v3640_v57  ;;  %v3686_v58 = vld [vmem:[%s3526_s22 + $0x38] sm:$0x1] }
  0x2b   : > { %v229_v13 = vrot.slane %v228_v59, 4  ;;  %v1213_v20 = vrot.slane %v1211_v10, 5  ;;  %v1215_v22 = vshrl.u32 %v3634_v52, 16  ;;  %v1221_v23 = vshll.u32 %v3646_v61, 16 }
  0x2c   : > { %v239_v17 = vrot.slane %v238_v5, 4  ;;  %3207 = vmatmul.mubr.msk.bf16.vlgmr.msra.gmra.mrb[0].mxu0 %vm391_vm3, %v2861_v12  ;;  %v1208_v28 = vor.u32 %v1207_v18, %v1204_v14  ;;  %v246_v30 = vshrl.u32 %v3653_v11, 16  ;;  %v249_v34 = vshll.u32 %v3653_v11, 16  ;;  %v3691_v14 = vld [vmem:[%s3526_s22 + $0x30] sm:$0xf] }
  0x2d   : > { %v234_v24 = vsel %vm3565_vm4, %v229_v13, %v233_v54  ;;  %3223 = vmatpush3.bf16.msra.mxu0 %v3573_v37  ;;  %v1217_v40 = vrot.slane %v1215_v22, 4  ;;  %v1223_v42 = vrot.slane %v1221_v23, 5  ;;  %v255_v43 = vshll.u32 %v3656_v19, 16  ;;  %v3697_v23 = vld [vmem:[%s3526_s22 + $0x34] sm:$0xf] }
  0x2e   : > { %v244_v39 = vsel %vm3565_vm4, %v239_v17, %v243_v9  ;;  %v1209_v47 = vrot.slane %v1208_v28, 4  ;;  %v248_v48 = vrot.slane %v246_v30, 4  ;;  %v251_v49 = vrot.slane %v249_v34, 5  ;;  %3431 = vmatprep.subr.msk.bf16.mxu0 %vm416_vm0, %v3556_v26 }
  0x2f   : > { %v2747_v46 = vcombine.low %v234_v24, %v244_v39  ;;  %v1218_v37 = vor.u32 %v1217_v40, %v1213_v20  ;;  %v257_v51 = vrot.slane %v255_v43, 5  ;;  %v259_v53 = vshrl.u32 %v3656_v19, 16  ;;  %v3702_v39 = vld [vmem:[%s3526_s22 + $0x38] sm:$0x1] }
  0x30   : > { %v265_v54 = vshll.u32 %v3666_v29, 16  ;;  %v1214_v55 = vsel %vm3565_vm4, %v1209_v47, %v1213_v20  ;;  %v252_v56 = vor.u32 %v251_v49, %v248_v48  ;;  %v1226_v59 = vshrl.u32 %v2844_v45, 16 }
  0x31   : > { %3138 = vmatprep.mubr.msk.bf16.mxu1 %vm391_vm3, %v2747_v46  ;;  %v1229_v0 = vshll.u32 %v2844_v45, 16  ;;  %v1219_v2 = vrot.slane %v1218_v37, 4  ;;  %v261_v26 = vrot.slane %v259_v53, 4  ;;  %v1235_v5 = vshll.u32 %v3676_v50, 16  ;;  %v2876_v37 = vld [vmem:[%s3526_s22 + $0xc] sm:$0xe] }
  0x32   : > { %v267_v4 = vrot.slane %v265_v54, 5  ;;  %v253_v9 = vrot.slane %v252_v56, 4  ;;  %v1228_v10 = vrot.slane %v1226_v59, 4  ;;  %v1239_v13 = vshrl.u32 %v3676_v50, 16  ;;  %v3714_v56 = vld [vmem:[%s3526_s22 + $0x3c] sm:$0xf] }
  0x33   : > { %v1231_v12 = vrot.slane %v1229_v0, 5  ;;  %v1224_v18 = vsel %vm3565_vm4, %v1219_v2, %v1223_v42  ;;  %v262_v17 = vor.u32 %v261_v26, %v257_v51  ;;  %v1237_v20 = vrot.slane %v1235_v5, 5 }
  0x34   : > { %v1245_v22 = vshll.u32 %v3686_v58, 16  ;;  %v2862_v24 = vcombine.low %v1214_v55, %v1224_v18  ;;  %v258_v28 = vsel %vm3565_vm4, %v253_v9, %v257_v51  ;;  %v1241_v34 = vrot.slane %v1239_v13, 4  ;;  %v3728_v18 = vld [vmem:[%s3526_s22 + $0x44] sm:$0x1] }
  0x35   : > { %v1232_v30 = vor.u32 %v1231_v12, %v1228_v10  ;;  %v263_v40 = vrot.slane %v262_v17, 4  ;;  %v270_v42 = vshrl.u32 %v3691_v14, 16  ;;  %v273_v45 = vshll.u32 %v3691_v14, 16  ;;  %v2877_v17 = vld [vmem:[%s3526_s22 + $0x18] sm:$0xe] }
  0x36   : > { %v1247_v43 = vrot.slane %v1245_v22, 5  ;;  %3210 = vmatprep.mubr.msk.bf16.mxu0 %vm391_vm3, %v2862_v24  ;;  %v1242_v47 = vor.u32 %v1241_v34, %v1237_v20  ;;  %v279_v48 = vshll.u32 %v3697_v23, 16  ;;  %v283_v49 = vshrl.u32 %v3697_v23, 16 }
  0x37   : > { %v1233_v46 = vrot.slane %v1232_v30, 4  ;;  %v268_v51 = vsel %vm3565_vm4, %v263_v40, %v267_v4  ;;  %v272_v53 = vrot.slane %v270_v42, 4  ;;  %v275_v54 = vrot.slane %v273_v45, 5  ;;  %v3725_v4 = vld [vmem:[%s3526_s22 + $0x40] sm:$0xf] }
  0x38   : > { %v289_v55 = vshll.u32 %v3702_v39, 16  ;;  %v2748_v59 = vcombine.low %v258_v28, %v268_v51  ;;  %v1243_v2 = vrot.slane %v1242_v47, 4  ;;  %v281_v26 = vrot.slane %v279_v48, 5  ;;  %v3739_v30 = vld [vmem:[%s3526_s22 + $0x48] sm:$0xf] }
  0x39   : > { %v1238_v0 = vsel %vm3565_vm4, %v1233_v46, %v1237_v20  ;;  %v276_v9 = vor.u32 %v275_v54, %v272_v53  ;;  %v285_v10 = vrot.slane %v283_v49, 4  ;;  %v2884_v13 = vrot.slane %v2876_v37, 9 }
  0x3a   : > { %v291_v12 = vrot.slane %v289_v55, 5  ;;  %3139 = vmatmul.mubr.msk.bf16.gmra.mrb[4].mxu1 %vm391_vm3, %v2748_v59  ;;  %v1248_v20 = vsel %vm3565_vm4, %v1243_v2, %v1247_v43  ;;  %v1547_v22 = vrot.slane %v1545_v62, 4  ;;  %v294_v24 = vshrl.u32 %v3714_v56, 16  ;;  %v3759_v55 = vld [vmem:[%s3526_s22 + $0x50] sm:$0x1] }
  0x3b   : > { %v297_v28 = vshll.u32 %v3714_v56, 16  ;;  %v2863_v34 = vcombine.low %v1238_v0, %v1248_v20  ;;  %v277_v40 = vrot.slane %v276_v9, 4  ;;  %v286_v42 = vor.u32 %v285_v10, %v281_v26 }
  0x3c   : > { %v1546_v45 = vsel %vm3720_vm7, %v2884_v13, %v1545_v62  ;;  %v1549_v43 = vsel %vm3720_vm7, %v1547_v22, %v1548_v63  ;;  %v296_v46 = vrot.slane %v294_v24, 4  ;;  %v303_v48 = vshll.u32 %v3725_v4, 16  ;;  %v3755_v62 = vld [vmem:[%s3526_s22 + $0x4c] sm:$0xf] }
  0x3d   : > { %v299_v47 = vrot.slane %v297_v28, 5  ;;  %3211 = vmatmul.mubr.msk.bf16.gmra.mrb[4].mxu0 %vm391_vm3, %v2863_v34  ;;  %v282_v49 = vsel %vm3565_vm4, %v277_v40, %v281_v26  ;;  %v287_v37 = vrot.slane %v286_v42, 4  ;;  %v2893_v15 = vcombine.low %v1546_v45, %v1549_v43  ;;  %v3777_v28 = vld [vmem:[%s3526_s22 + $0x54] sm:$0xf]  ;;  %v3788_v34 = vld [vmem:[%s4404_s1 + $0xe] sm:$0x3] }
  0x3e   : > { %v307_v51 = vshrl.u32 %v3725_v4, 16  ;;  %v305_v53 = vrot.slane %v303_v48, 5  ;;  %v313_v63 = vshll.u32 %v3728_v18, 16  ;;  %v2885_v54 = vrot.slane %v2877_v17, 9 }
  0x3f   : > { %v300_v16 = vor.u32 %v299_v47, %v296_v46  ;;  %v292_v59 = vsel %vm3565_vm4, %v287_v37, %v291_v12  ;;  %3224 = vmatprep.mubr.msk.bf16.mxu0 %vm391_vm3, %v2893_v15  ;;  %v1556_v2 = vsel %vm3720_vm7, %v3621_v35, %v1555_v33  ;;  %v318_v26 = vshrl.u32 %v3739_v30, 16  ;;  %v2878_v12 = vld [vmem:[%s3526_s22 + $0x24] sm:$0xe]  ;;  %v3793_v37 = vld [vmem:[%s3526_s22 + $0x58] sm:$0xf] }
  0x40   : > { %v309_v0 = vrot.slane %v307_v51, 4  ;;  %v2749_v9 = vcombine.low %v282_v49, %v292_v59  ;;  %v315_v13 = vrot.slane %v313_v63, 5  ;;  %v1553_v17 = vsel %vm3720_vm7, %v2885_v54, %v1552_v25  ;;  %v3802_v54 = vld [vmem:[%s3526_s22 + $0x5c] sm:$0x1] }
  0x41   : > { %v301_v10 = vrot.slane %v300_v16, 4  ;;  %v2894_v22 = vcombine.low %v1553_v17, %v1556_v2  ;;  %v320_v24 = vrot.slane %v318_v26, 4  ;;  %v321_v1 = vshll.u32 %v3739_v30, 16 }
  0x42   : > { %v310_v20 = vor.u32 %v309_v0, %v305_v53  ;;  %3142 = vmatprep.mubr.msk.bf16.mxu1 %vm391_vm3, %v2749_v9  ;;  %v327_v35 = vshll.u32 %v3755_v62, 16  ;;  %v331_v60 = vshrl.u32 %v3755_v62, 16  ;;  %v337_v25 = vshll.u32 %v3759_v55, 16 }
  0x43   : > { %v306_v33 = vsel %vm3565_vm4, %v301_v10, %v305_v53  ;;  %v323_v42 = vrot.slane %v321_v1, 5  ;;  %v2886_v45 = vrot.slane %v2878_v12, 9  ;;  %v1559_v43 = vrot.slane %v3634_v52, 5  ;;  %v2879_v10 = vld [vmem:[%s3526_s22 + $0x30] sm:$0xe] }
  0x44   : > { %v311_v40 = vrot.slane %v310_v20, 4  ;;  %v329_v46 = vrot.slane %v327_v35, 5  ;;  %v333_v47 = vrot.slane %v331_v60, 4  ;;  %v339_v48 = vrot.slane %v337_v25, 5 }
  0x45   : > { %v1562_v49 = vrot.slane %v3646_v61, 5  ;;  %3225 = vmatmul.mubr.msk.bf16.vlgmr.msra.gmra.mrb[0].mxu0 %vm391_vm3, %v2894_v22  ;;  %v324_v51 = vor.u32 %v323_v42, %v320_v24  ;;  %v1560_v16 = vsel %vm3720_vm7, %v2886_v45, %v1559_v43  ;;  %v1561_v53 = vrot.slane %v1559_v43, 4  ;;  %v3823_v42 = vld [vmem:[%s3526_s22 + $0x40] sm:$0xf]  ;;  %v3826_v45 = vld [vmem:[%s3526_s22 + $0x44] sm:$0x1] }
  0x46   : > { %v316_v15 = vsel %vm3565_vm4, %v311_v40, %v315_v13  ;;  %3241 = vmatpush3.bf16.msra.mxu0 %v3577_v41  ;;  %v334_v52 = vor.u32 %v333_v47, %v329_v46  ;;  %v342_v61 = vshrl.u32 %v3777_v28, 16  ;;  %v345_v59 = vshll.u32 %v3777_v28, 16 }
  0x47   : > { %v2750_v63 = vcombine.low %v306_v33, %v316_v15  ;;  %v325_v0 = vrot.slane %v324_v51, 4  ;;  %v1563_v2 = vsel %vm3720_vm7, %v1561_v53, %v1562_v49  ;;  %v351_v26 = vshll.u32 %v3793_v37, 16  ;;  %3432 = vmatprep.subr.msk.bf16.mxu0 %vm416_vm0, %v3788_v34  ;;  %v2880_v33 = vld [vmem:[%s3526_s22 + $0x3c] sm:$0xe] }
  0x48   : > { %v355_v9 = vshrl.u32 %v3793_v37, 16  ;;  %v335_v41 = vrot.slane %v334_v52, 4  ;;  %v2895_v13 = vcombine.low %v1560_v16, %v1563_v2  ;;  %v344_v17 = vrot.slane %v342_v61, 4  ;;  %v2881_v2 = vld [vmem:[%s3526_s22 + $0x48] sm:$0xe] }
  0x49   : > { %3143 = vmatmul.mubr.msk.bf16.gmra.mrb[8].mxu1 %vm391_vm3, %v2750_v63  ;;  %v347_v12 = vrot.slane %v345_v59, 5  ;;  %v330_v20 = vsel %vm3565_vm4, %v325_v0, %v329_v46  ;;  %v353_v22 = vrot.slane %v351_v26, 5  ;;  %v361_v1 = vshll.u32 %v3802_v54, 16  ;;  %v3841_v59 = vld [vmem:[%s3526_s22 + $0x4c] sm:$0xf] }
  0x4a   : > { %v357_v24 = vrot.slane %v355_v9, 4  ;;  %v340_v35 = vsel %vm3565_vm4, %v335_v41, %v339_v48  ;;  %3228 = vmatprep.mubr.msk.bf16.mxu0 %vm391_vm3, %v2895_v13  ;;  %v2887_v25 = vrot.slane %v2879_v10, 9  ;;  %v1566_v40 = vrot.slane %v3676_v50, 5  ;;  %v3844_v0 = vld [vmem:[%s3526_s22 + $0x50] sm:$0x1] }
  0x4b   : > { %v348_v60 = vor.u32 %v347_v12, %v344_v17  ;;  %v2751_v43 = vcombine.low %v330_v20, %v340_v35  ;;  %v363_v47 = vrot.slane %v361_v1, 5  ;;  %v1569_v49 = vrot.slane %v3686_v58, 5  ;;  %v3852_v17 = vld [vmem:[%s3526_s22 + $0x58] sm:$0xf]  ;;  %v3855_v12 = vld [vmem:[%s3526_s22 + $0x5c] sm:$0x1] }
  0x4c   : > { %v358_v46 = vor.u32 %v357_v24, %v353_v22  ;;  %v1567_v48 = vsel %vm3720_vm7, %v2887_v25, %v1566_v40  ;;  %v1568_v51 = vrot.slane %v1566_v40, 4  ;;  %v2888_v16 = vrot.slane %v2880_v33, 9  ;;  %4415 = vst [vmem:[#allocation2_spill] sm:$0xff] %v3855_v12  ;;  %v3865_v35 = vld [vmem:[%s3526_s22 + $0x64] sm:$0xf] }
  0x4d   : > { %v349_v15 = vrot.slane %v348_v60, 4  ;;  %3146 = vmatprep.mubr.msk.bf16.mxu1 %vm391_vm3, %v2751_v43  ;;  %v1573_v53 = vrot.slane %v3823_v42, 5  ;;  %v1576_v63 = vrot.slane %v3826_v45, 5  ;;  %v2761_v61 = vcombine.low %v3529_v6, %v3532_v7  ;;  %v2882_v6 = vld [vmem:[%s3526_s22 + $0x54] sm:$0xe]  ;;  %4416 = vst [vmem:[#allocation3_spill] sm:$0xff] %v3865_v35 }
  0x4e   : > { %v359_v50 = vrot.slane %v358_v46, 4  ;;  %v1570_v58 = vsel %vm3720_vm7, %v1568_v51, %v1569_v49  ;;  %v1580_v24 = vrot.slane %v3841_v59, 5  ;;  %v1583_v1 = vrot.slane %v3844_v0, 5  ;;  %v3868_v60 = vld [vmem:[%s3526_s22 + $0x68] sm:$0x1] }
  0x4f   : > { %v354_v52 = vsel %vm3565_vm4, %v349_v15, %v353_v22  ;;  %v2896_v9 = vcombine.low %v1567_v48, %v1570_v58  ;;  %v1574_v10 = vsel %vm3720_vm7, %v2888_v16, %v1573_v53  ;;  %v1575_v41 = vrot.slane %v1573_v53, 4  ;;  %4417 = vst [vmem:[#allocation4_spill] sm:$0xff] %v3868_v60 }
  0x50   : > { %v364_v26 = vsel %vm3565_vm4, %v359_v50, %v363_v47  ;;  %v2889_v22 = vrot.slane %v2881_v2, 9  ;;  %v1582_v40 = vrot.slane %v1580_v24, 4  ;;  %v2890_v43 = vrot.slane %v2882_v6, 9  ;;  %v2883_v47 = vld [vmem:[%s3526_s22 + $0x60] sm:$0xe] }
  0x51   : > { %v2752_v13 = vcombine.low %v354_v52, %v364_v26  ;;  %3229 = vmatmul.mubr.msk.bf16.gmra.mrb[4].mxu0 %vm391_vm3, %v2896_v9  ;;  %v1577_v20 = vsel %vm3720_vm7, %v1575_v41, %v1576_v63  ;;  %v1587_v46 = vrot.slane %v3852_v17, 5  ;;  %v717_v49 = vrot.slane %v3570_v36, 5  ;;  %v683_v2 = vld [vmem:[%s3526_s22 + $0x18] sm:$0xe]  ;;  %v3900_v6 = vld [vmem:[%s4404_s1 + $0x6] sm:$0x3] }
  0x52   : > { %v2897_v33 = vcombine.low %v1574_v10, %v1577_v20  ;;  %v1581_v25 = vsel %vm3720_vm7, %v2889_v22, %v1580_v24  ;;  %v1590_v15 = vrot.slane %v3855_v12, 5  ;;  %v1584_v48 = vsel %vm3720_vm7, %v1582_v40, %v1583_v1  ;;  %v685_v1 = vld [vmem:[%s3526_s22 + $0x30] sm:$0xe] }
  0x53   : > { %3147 = vmatmul.mubr.msk.bf16.gmra.mrb[12].mxu1 %vm391_vm3, %v2752_v13  ;;  %v1588_v51 = vsel %vm3720_vm7, %v2890_v43, %v1587_v46  ;;  %v1589_v16 = vrot.slane %v1587_v46, 4  ;;  %v1594_v50 = vrot.slane %v3865_v35, 5  ;;  %v2762_v53 = vcombine.low %v3561_v31, %v3570_v36  ;;  %v684_v36 = vld [vmem:[%s3526_s22 + $0x24] sm:$0xe]  ;;  %v4174_v12 = vld [vmem:[%s3526_s22 + $0x70] sm:$0xf] }
  0x54   : > { %3152 = vmatprep.mubr.msk.bf16.mxu1 %vm391_vm3, %v2761_v61  ;;  %3232 = vmatprep.mubr.msk.bf16.mxu0 %vm391_vm3, %v2897_v33  ;;  %v2898_v63 = vcombine.low %v1581_v25, %v1584_v48  ;;  %v2891_v52 = vrot.slane %v2883_v47, 9  ;;  %v1597_v58 = vrot.slane %v3868_v60, 5  ;;  %v682_v61 = vld [vmem:[%s3526_s22 + $0xc] sm:$0xe]  ;;  %v720_v26 = vrot.slane %v3580_v44, 5 }
  0x55   : > { %v2763_v9 = vcombine.low %v3609_v21, %v3616_v27  ;;  %v1591_v10 = vsel %vm3720_vm7, %v1589_v16, %v1590_v15  ;;  %v1596_v41 = vrot.slane %v1594_v50, 4  ;;  %v815_v13 = vsel %vm416_vm0, %v3640_v57, 0  ;;  %v3448_v16 = vld [vmem:[%s3526_s22 + $0x18] sm:$0xff]   ;;  %v4146_v60 = vld [vmem:[%s3526_s22 + $0x64] sm:$0xf] }
  0x56   : > { %v2899_v31 = vcombine.low %v1588_v51, %v1591_v10  ;;  %v2778_v44 = vrot.slane %v682_v61, 9  ;;  %v719_v20 = vrot.slane %v717_v49, 4  ;;  %v2779_v21 = vrot.slane %v683_v2, 9  ;;  %4418 = vst [vmem:[#allocation5_spill] sm:$0xff] %v4146_v60 }
  0x57   : > { %v1595_v22 = vsel %vm3720_vm7, %v2891_v52, %v1594_v50  ;;  %v1598_v57 = vsel %vm3720_vm7, %v1596_v41, %v1597_v58  ;;  %v724_v24 = vrot.slane %v3616_v27, 5  ;;  %v727_v40 = vrot.slane %v3624_v38, 5 }
  0x58   : > { %v3913_v33 = vsel %vm3720_vm7, %v2778_v44, %v717_v49  ;;  %v3917_v25 = vsel %vm3720_vm7, %v719_v20, %v720_v26  ;;  %v2780_v43 = vrot.slane %v684_v36, 9  ;;  %v2900_v49 = vcombine.low %v1595_v22, %v1598_v57  ;;  %v2942_v26 = vld [vmem:[%s3526_s22 + $0x18] sm:$0xf]  ;;  %v3450_v57 = vld [vmem:[%s3526_s22 + $0x24] sm:$0xff]  }
  0x59   : > { %3233 = vmatmul.mubr.msk.bf16.gmra.mrb[8].mxu0 %vm391_vm3, %v2898_v63  ;;  %v2787_v27 = vcombine.low %v3913_v33, %v3917_v25  ;;  %v3926_v46 = vsel %vm3720_vm7, %v2779_v21, %v724_v24  ;;  %v726_v47 = vrot.slane %v724_v24, 4  ;;  %v731_v15 = vrot.slane %v3656_v19, 5 }
  0x5a   : > { %3236 = vmatprep.mubr.msk.bf16.mxu0 %vm391_vm3, %v2899_v31  ;;  %v734_v48 = vrot.slane %v3666_v29, 5  ;;  %v2781_v38 = vrot.slane %v685_v1, 9  ;;  %v2764_v51 = vcombine.low %v3653_v11, %v3656_v19  ;;  %v741_v63 = vrot.slane %v3702_v39, 5  ;;  %v686_v19 = vld [vmem:[%s3526_s22 + $0x3c] sm:$0xe] }
  0x5b   : > { %3153 = vmatmul.mubr.msk.bf16.vlgmr.msra.gmra.mrb[0].mxu1 %vm391_vm3, %v2762_v53  ;;  %v3935_v50 = vsel %vm3720_vm7, %v726_v47, %v727_v40  ;;  %v738_v53 = vrot.slane %v3697_v23, 5  ;;  %v2765_v52 = vcombine.low %v3691_v14, %v3697_v23  ;;  %v3945_v58 = vsel %vm3720_vm7, %v2780_v43, %v731_v15  ;;  %v681_v14 = vld [vmem:[%s3526_s22] sm:$0xe]  ;;  %v3973_v31 = vld [vmem:[%s3526_s22 + $0x1c] sm:$0xf] }
  0x5c   : > { %3169 = vmatpush3.bf16.msra.mxu1 %v815_v13  ;;  %3156 = vmatprep.mubr.msk.bf16.mxu1 %vm391_vm3, %v2763_v9  ;;  %v2788_v29 = vcombine.low %v3926_v46, %v3935_v50  ;;  %v733_v11 = vrot.slane %v731_v15, 4  ;;  %v710_v61 = vrot.slane %v3532_v7, 5  ;;  %v2782_v10 = vrot.slane %v686_v19, 9  ;;  %v687_v1 = vld [vmem:[%s3526_s22 + $0x48] sm:$0xe] }
  0x5d   : > { %3427 = vmatprep.subr.msk.bf16.mxu1 %vm416_vm0, %v3900_v6  ;;  %v3951_v2 = vsel %vm3720_vm7, %v2781_v38, %v738_v53  ;;  %v740_v39 = vrot.slane %v738_v53, 4  ;;  %v713_v41 = vrot.slane %v3535_v8, 5  ;;  %v2777_v36 = vrot.slane %v681_v14, 9  ;;  %v3999_v38 = vld [vmem:[%s4404_s1 + $0x10] sm:$0x3] }
  0x5e   : > { %v3957_v23 = vsel %vm3720_vm7, %v733_v11, %v734_v48  ;;  %v712_v44 = vrot.slane %v710_v61, 4  ;;  %v745_v20 = vrot.slane %v3725_v4, 5  ;;  %v748_v21 = vrot.slane %v3728_v18, 5  ;;  %v4020_v14 = vld [vmem:[%s3526_s22 + $0x28] sm:$0xf] }
  0x5f   : > { %v3966_v9 = vsel %vm3720_vm7, %v740_v39, %v741_v63  ;;  %v2766_v22 = vcombine.low %v3714_v56, %v3725_v4  ;;  %v1989_v24 = vshrl.u32 %v2942_v26, 16  ;;  %v1992_v8 = vshll.u32 %v2942_v26, 16  ;;  %v3452_v4 = vld [vmem:[%s3526_s22 + $0x30] sm:$0xff]   ;;  %v4122_v46 = vld [vmem:[%s3526_s22 + $0x44] sm:$0x1] }
  0x60   : > { %v1998_v40 = vshll.u32 %v3973_v31, 16  ;;  %v2002_v43 = vshrl.u32 %v3973_v31, 16  ;;  %v3985_v47 = vsel %vm3720_vm7, %v2782_v10, %v745_v20  ;;  %v2231_v18 = vsel %vm416_vm0, %v3788_v34, 0  ;;  %v2960_v7 = vld [vmem:[%s3526_s22 + $0x60] sm:$0xf] }
  0x61   : > { %3237 = vmatmul.mubr.msk.bf16.gmra.mrb[12].mxu0 %vm391_vm3, %v2900_v49  ;;  %v747_v49 = vrot.slane %v745_v20, 4  ;;  %v2767_v56 = vcombine.low %v3739_v30, %v3755_v62  ;;  %v711_v15 = vsel %vm3720_vm7, %v2777_v36, %v710_v61  ;;  %v714_v48 = vsel %vm3720_vm7, %v712_v44, %v713_v41  ;;  %v4007_v30 = vld [vmem:[%s3526_s22 + $0x20] sm:$0x1]  ;;  %v2945_v61 = vld [vmem:[%s3526_s22 + $0x24] sm:$0xf] }
  0x62   : > { %3242 = vmatprep.mubr.msk.bf16.mxu0 %vm391_vm3, %v3448_v16  ;;  %v2783_v34 = vrot.slane %v687_v1, 9  ;;  %v1991_v16 = vrot.slane %v1989_v24, 4  ;;  %v1994_v53 = vrot.slane %v1992_v8, 5  ;;  %v4013_v11 = vrot.slane %v1998_v40, 5  ;;  %v688_v44 = vld [vmem:[%s3526_s22 + $0x54] sm:$0xe] }
  0x63   : > { %3157 = vmatmul.mubr.msk.bf16.gmra.mrb[4].mxu1 %vm391_vm3, %v2764_v51  ;;  %v4003_v51 = vsel %vm3720_vm7, %v747_v49, %v748_v21  ;;  %v2004_v19 = vrot.slane %v2002_v43, 4  ;;  %v755_v39 = vrot.slane %v3759_v55, 5  ;;  %v2768_v10 = vcombine.low %v3777_v28, %v3793_v37  ;;  %v2948_v55 = vld [vmem:[%s3526_s22 + $0x30] sm:$0xf]  ;;  %v3454_v20 = vld [vmem:[%s3526_s22 + $0x3c] sm:$0xff]   ;;  %v3455_v1 = vld [vmem:[%s3526_s22 + $0x48] sm:$0xff]  }
  0x64   : > { %3160 = vmatprep.mubr.msk.bf16.mxu1 %vm391_vm3, %v2765_v52  ;;  %v752_v52 = vrot.slane %v3755_v62, 5  ;;  %v2786_v41 = vcombine.low %v711_v15, %v714_v48  ;;  %v2008_v36 = vshll.u32 %v4007_v30, 16  ;;  %v1995_v21 = vor.u32 %v1994_v53, %v1991_v16  ;;  %v4039_v8 = vld [vmem:[%s3526_s22 + $0x34] sm:$0xf] }
  0x65   : > { %v2005_v28 = vor.u32 %v2004_v19, %v4013_v11  ;;  %v2022_v40 = vshll.u32 %v4020_v14, 16  ;;  %v2026_v43 = vshrl.u32 %v4020_v14, 16  ;;  %v759_v15 = vrot.slane %v3793_v37, 5 }
  0x66   : > { %v4024_v62 = vsel %vm3720_vm7, %v2783_v34, %v752_v52  ;;  %v754_v26 = vrot.slane %v752_v52, 4  ;;  %v2046_v48 = vshll.u32 %v4039_v8, 16  ;;  %v2050_v34 = vshrl.u32 %v4039_v8, 16 }
  0x67   : > { %v762_v16 = vrot.slane %v3802_v54, 5  ;;  %v1996_v53 = vrot.slane %v1995_v21, 4  ;;  %v2010_v52 = vrot.slane %v2008_v36, 5  ;;  %v2006_v37 = vrot.slane %v2005_v28, 4  ;;  %v4062_v36 = vld [vmem:[%s3526_s22 + $0x2c] sm:$0x1] }
  0x68   : > { %v4036_v24 = vsel %vm3720_vm7, %v754_v26, %v755_v39  ;;  %v4058_v26 = vrot.slane %v2022_v40, 5  ;;  %v4069_v21 = vld [vmem:[%s3526_s22 + $0x38] sm:$0x1]  ;;  %v1014_v28 = vsel %vm416_vm0, %v3900_v6, 0 }
  0x69   : > { %3243 = vmatmul.mubr.msk.bf16.vlgmr.msra.gmra.mrb[0].mxu0 %vm391_vm3, %v3450_v57  ;;  %v2016_v57 = vshll.u32 %v2945_v61, 16  ;;  %v3456_v40 = vld [vmem:[%s3526_s22 + $0x54] sm:$0xff]  }
  0x6a   : > { %3259 = vmatpush3.bf16.msra.mxu0 %v2231_v18  ;;  %3246 = vmatprep.mubr.msk.bf16.mxu0 %vm391_vm3, %v3452_v4  ;;  %v2037_v18 = vshrl.u32 %v2948_v55, 16  ;;  %v2784_v4 = vrot.slane %v688_v44, 9 }
  0x6b   : > { %3161 = vmatmul.mubr.msk.bf16.gmra.mrb[8].mxu1 %vm391_vm3, %v2766_v22  ;;  %3433 = vmatprep.subr.msk.bf16.mxu0 %vm416_vm0, %v3999_v38  ;;  %v2013_v22 = vshrl.u32 %v2945_v61, 16  ;;  %v761_v61 = vrot.slane %v759_v15, 4  ;;  %v2018_v54 = vrot.slane %v2016_v57, 5  ;;  %v2052_v57 = vrot.slane %v2050_v34, 4  ;;  %v2954_v34 = vld [vmem:[%s3526_s22 + $0x48] sm:$0xf] }
  0x6c   : > { %3164 = vmatprep.mubr.msk.bf16.mxu1 %vm391_vm3, %v2767_v56  ;;  %v2040_v56 = vshll.u32 %v2948_v55, 16  ;;  %v4054_v19 = vsel %vm3720_vm7, %v2784_v4, %v759_v15  ;;  %v2028_v55 = vrot.slane %v2026_v43, 4  ;;  %v2039_v44 = vrot.slane %v2037_v18, 4  ;;  %v4080_v43 = vld [vmem:[%s3526_s22 + $0x40] sm:$0xf] }
  0x6d   : > { %v2015_v39 = vrot.slane %v2013_v22, 4  ;;  %v4071_v22 = vrot.slane %v2046_v48, 5  ;;  %v3457_v18 = vld [vmem:[%s3526_s22 + $0x60] sm:$0xff]   ;;  %v2011_v4 = vsel %vm3565_vm4, %v2006_v37, %v2010_v52  ;;  %v2032_v48 = vshll.u32 %v4062_v36, 16 }
  0x6e   : > { %v2085_v52 = vshrl.u32 %v2954_v34, 16  ;;  %v2088_v37 = vshll.u32 %v2954_v34, 16 }
  0x6f   : > { %v2019_v15 = vor.u32 %v2018_v54, %v2015_v39  ;;  %v2053_v63 = vor.u32 %v2052_v57, %v4071_v22  ;;  %v2957_v57 = vld [vmem:[%s3526_s22 + $0x54] sm:$0xf] }
  0x70   : > { %v2087_v50 = vrot.slane %v2085_v52, 4  ;;  %v2112_v34 = vshll.u32 %v2957_v57, 16 }
  0x71   : > { %3247 = vmatmul.mubr.msk.bf16.gmra.mrb[4].mxu0 %vm391_vm3, %v3454_v20  ;;  %v2042_v20 = vrot.slane %v2040_v56, 5  ;;  %v2001_v56 = vsel %vm3565_vm4, %v1996_v53, %v4013_v11  ;;  %v2070_v11 = vshll.u32 %v4080_v43, 16  ;;  %v2074_v53 = vshrl.u32 %v4080_v43, 16 }
  0x72   : > { %3250 = vmatprep.mubr.msk.bf16.mxu0 %vm391_vm3, %v3455_v1  ;;  %v2056_v1 = vshll.u32 %v4069_v21, 16  ;;  %v2967_v54 = vcombine.low %v2001_v56, %v2011_v4  ;;  %v2054_v56 = vrot.slane %v2053_v63, 4  ;;  %v4127_v63 = vld [vmem:[%s3526_s22 + $0x50] sm:$0x1] }
  0x73   : > { %3165 = vmatmul.mubr.msk.bf16.gmra.mrb[12].mxu1 %vm391_vm3, %v2768_v10  ;;  %v4066_v10 = vsel %vm3720_vm7, %v761_v61, %v762_v16  ;;  %v4091_v16 = vld [vmem:[%s3526_s22 + $0x4c] sm:$0xf]  ;;  %v2029_v61 = vor.u32 %v2028_v55, %v4058_v26  ;;  %v2043_v6 = vor.u32 %v2042_v20, %v2039_v44  ;;  %v2020_v55 = vrot.slane %v2019_v15, 4 }
  0x74   : > { %3170 = vmatprep.mubr.msk.bf16.mxu1 %vm391_vm3, %v2786_v41  ;;  %v2951_v41 = vld [vmem:[%s3526_s22 + $0x3c] sm:$0xf]  ;;  %v2094_v39 = vshll.u32 %v4091_v16, 16  ;;  %v2034_v44 = vrot.slane %v2032_v48, 5  ;;  %v2098_v20 = vshrl.u32 %v4091_v16, 16  ;;  %v2058_v33 = vrot.slane %v2056_v1, 5 }
  0x75   : > { %v2061_v49 = vshrl.u32 %v2951_v41, 16  ;;  %v2064_v13 = vshll.u32 %v2951_v41, 16  ;;  %v2030_v41 = vrot.slane %v2029_v61, 4  ;;  %v4115_v15 = vrot.slane %v2070_v11, 5 }
  0x76   : > { %v2076_v48 = vrot.slane %v2074_v53, 4  ;;  %v2109_v1 = vshrl.u32 %v2957_v57, 16  ;;  %v1283_v11 = vshll.u32 %v3841_v59, 16  ;;  %v2025_v53 = vsel %vm3565_vm4, %v2020_v55, %v4058_v26 }
  0x77   : > { %v2063_v25 = vrot.slane %v2061_v49, 4  ;;  %v2066_v4 = vrot.slane %v2064_v13, 5  ;;  %v4124_v49 = vrot.slane %v2094_v39, 5  ;;  %v2100_v13 = vrot.slane %v2098_v20, 4 }
  0x78   : > { %v2035_v52 = vsel %vm3565_vm4, %v2030_v41, %v2034_v44  ;;  %v2077_v57 = vor.u32 %v2076_v48, %v4115_v15  ;;  %v2059_v26 = vsel %vm3565_vm4, %v2054_v56, %v2058_v33  ;;  %v2111_v44 = vrot.slane %v2109_v1, 4  ;;  %v4165_v56 = vld [vmem:[%s3526_s22 + $0x5c] sm:$0x1] }
  0x79   : > { %3251 = vmatmul.mubr.msk.bf16.gmra.mrb[8].mxu0 %vm391_vm3, %v3456_v40  ;;  %v2044_v40 = vrot.slane %v2043_v6, 4  ;;  %v2067_v20 = vor.u32 %v2066_v4, %v2063_v25  ;;  %v2101_v41 = vor.u32 %v2100_v13, %v4124_v49  ;;  %v4420_v33 = vcombine.low %v3951_v2, %v3966_v9 }
  0x7a   : > { %3254 = vmatprep.mubr.msk.bf16.mxu0 %vm391_vm3, %v3457_v18  ;;  %v3458_v18 = vld [vmem:[%s3526_s22 + $0x6c] sm:$0xff]   ;;  %v2133_v4 = vshrl.u32 %v2960_v7, 16  ;;  %v1287_v48 = vshrl.u32 %v3841_v59, 16  ;;  %v2968_v13 = vcombine.low %v2025_v53, %v2035_v52 }
  0x7b   : > { %3171 = vmatmul.mubr.msk.bf16.vlgmr.msra.gmra.mrb[0].mxu1 %vm391_vm3, %v2787_v27  ;;  %v4112_v27 = vld [vmem:[%s3526_s22 + $0x58] sm:$0xf]  ;;  %v2049_v39 = vsel %vm3565_vm4, %v2044_v40, %v4071_v22  ;;  %v4419_v22 = vcombine.low %v3945_v58, %v3957_v23  ;;  %v2114_v40 = vrot.slane %v2112_v34, 5  ;;  %v2136_v58 = vshll.u32 %v2960_v7, 16 }
  0x7c   : > { %3187 = vmatpush3.bf16.msra.mxu1 %v1014_v28  ;;  %3174 = vmatprep.mubr.msk.bf16.mxu1 %vm391_vm3, %v2788_v29  ;;  %v3467_v28 = vld [vmem:[%s4404_s1 + $0x8] sm:$0x3]  ;;  %v2090_v29 = vrot.slane %v2088_v37, 5  ;;  %v2118_v61 = vshll.u32 %v4112_v27, 16  ;;  %v2122_v6 = vshrl.u32 %v4112_v27, 16  ;;  %v2485_v37 = vsel %vm416_vm0, %v3999_v38, 0 }
  0x7d   : > { %3429 = vmatprep.subr.msk.bf16.mxu1 %vm416_vm0, %v3467_v28  ;;  %v2080_v28 = vshll.u32 %v4122_v46, 16  ;;  %v2104_v38 = vshll.u32 %v4127_v63, 16  ;;  %v2142_v23 = vshll.u32 %v4146_v60, 16  ;;  %v2969_v34 = vcombine.low %v2049_v39, %v2059_v26 }
  0x7e   : > { %v2091_v55 = vor.u32 %v2090_v29, %v2087_v50  ;;  %v4158_v25 = vrot.slane %v2118_v61, 5  ;;  %v2068_v50 = vrot.slane %v2067_v20, 4  ;;  %v2078_v29 = vrot.slane %v2077_v57, 4 }
  0x7f   : > { %v2082_v1 = vrot.slane %v2080_v28, 5  ;;  %v2106_v9 = vrot.slane %v2104_v38, 5  ;;  %v2102_v61 = vrot.slane %v2101_v41, 4  ;;  %v2128_v7 = vshll.u32 %v4165_v56, 16  ;;  %v4186_v28 = vld [vmem:[%s3526_s22 + $0x68] sm:$0x1] }
  0x80   : > { %v2092_v2 = vrot.slane %v2091_v55, 4  ;;  %v2135_v35 = vrot.slane %v2133_v4, 4  ;;  %v4176_v59 = vrot.slane %v2142_v23, 5  ;;  %v4178_v57 = vrot.slane %v1283_v11, 5 }
  0x81   : > { %3255 = vmatmul.mubr.msk.bf16.gmra.mrb[12].mxu0 %vm391_vm3, %v3458_v18  ;;  %v2124_v18 = vrot.slane %v2122_v6, 4  ;;  %v2115_v6 = vor.u32 %v2114_v40, %v2111_v44  ;;  %v1289_v53 = vrot.slane %v1287_v48, 4  ;;  %v2073_v52 = vsel %vm3565_vm4, %v2068_v50, %v4115_v15 }
  0x82   : > { %3260 = vmatprep.mubr.msk.bf16.mxu0 %vm391_vm3, %v2967_v54  ;;  %v2146_v54 = vshrl.u32 %v4146_v60, 16  ;;  %v2138_v60 = vrot.slane %v2136_v58, 5  ;;  %v2083_v39 = vsel %vm3565_vm4, %v2078_v29, %v2082_v1  ;;  %v2166_v38 = vshll.u32 %v4174_v12, 16  ;;  %v3459_v1 = vld [vmem:[%s3526_s22 + $0xc] sm:$0xff]  }
  0x83   : > { %3175 = vmatmul.mubr.msk.bf16.gmra.mrb[4].mxu1 %vm391_vm3, %v4419_v22  ;;  %v2125_v22 = vor.u32 %v2124_v18, %v4158_v25  ;;  %v2170_v44 = vshrl.u32 %v4174_v12, 16  ;;  %v4421_v11 = vcombine.low %v3985_v47, %v4003_v51  ;;  %v2097_v15 = vsel %vm3565_vm4, %v2092_v2, %v4124_v49 }
  0x84   : > { %3178 = vmatprep.mubr.msk.bf16.mxu1 %vm391_vm3, %v4420_v33  ;;  %v2963_v33 = vld [vmem:[%s3526_s22 + $0x6c] sm:$0xf]  ;;  %v2148_v20 = vrot.slane %v2146_v54, 4  ;;  %v2107_v41 = vsel %vm3565_vm4, %v2102_v61, %v2106_v9  ;;  %v2116_v40 = vrot.slane %v2115_v6, 4  ;;  %v2130_v18 = vrot.slane %v2128_v7, 5 }
  0x85   : > { %v2157_v26 = vshrl.u32 %v2963_v33, 16  ;;  %v2160_v55 = vshll.u32 %v2963_v33, 16  ;;  %v4422_v4 = vcombine.low %v4024_v62, %v4036_v24  ;;  %v2126_v47 = vrot.slane %v2125_v22, 4  ;;  %v2850_v22 = vld [vmem:[%s3526_s22 + $0x48] sm:$0xf] }
  0x86   : > { %v2139_v51 = vor.u32 %v2138_v60, %v2135_v35  ;;  %v2152_v49 = vshll.u32 %v4186_v28, 16  ;;  %v1290_v58 = vor.u32 %v1289_v53, %v4178_v57  ;;  %v1293_v23 = vshll.u32 %v3844_v0, 16  ;;  %v4215_v60 = vld [vmem:[%s3526_s22 + $0x74] sm:$0x1] }
  0x87   : > { %v2970_v54 = vcombine.low %v2073_v52, %v2083_v39  ;;  %v2159_v48 = vrot.slane %v2157_v26, 4  ;;  %v2162_v62 = vrot.slane %v2160_v55, 5  ;;  %v4209_v24 = vrot.slane %v2166_v38, 5 }
  0x88   : > { %v2172_v50 = vrot.slane %v2170_v44, 4  ;;  %v2971_v29 = vcombine.low %v2097_v15, %v2107_v41  ;;  %v2121_v35 = vsel %vm3565_vm4, %v2116_v40, %v4158_v25  ;;  %v2140_v0 = vrot.slane %v2139_v51, 4  ;;  %v3461_v51 = vld [vmem:[%s3526_s22 + $0x24] sm:$0xff]  }
  0x89   : > { %3261 = vmatmul.mubr.msk.bf16.vlgmr.msra.gmra.mrb[0].mxu0 %vm391_vm3, %v2968_v13  ;;  %v2131_v13 = vsel %vm3565_vm4, %v2126_v47, %v2130_v18  ;;  %v2154_v2 = vrot.slane %v2152_v49, 5  ;;  %v1291_v9 = vrot.slane %v1290_v58, 4  ;;  %v1295_v61 = vrot.slane %v1293_v23, 5 }
  0x8a   : > { %3277 = vmatpush3.bf16.msra.mxu0 %v2485_v37  ;;  %3264 = vmatprep.mubr.msk.bf16.mxu0 %vm391_vm3, %v2969_v34  ;;  %v2149_v37 = vor.u32 %v2148_v20, %v4176_v59  ;;  %v2380_v6 = vrot.slane %v3973_v31, 5  ;;  %v2163_v7 = vor.u32 %v2162_v62, %v2159_v48  ;;  %v2173_v33 = vor.u32 %v2172_v50, %v4209_v24  ;;  %v2983_v20 = vld [vmem:[%s3526_s22 + $0x18] sm:$0xe]  ;;  %v2985_v62 = vld [vmem:[%s3526_s22 + $0x30] sm:$0xe] }
  0x8b   : > { %3179 = vmatmul.mubr.msk.bf16.gmra.mrb[8].mxu1 %vm391_vm3, %v4421_v11  ;;  %v2176_v25 = vshll.u32 %v4215_v60, 16  ;;  %v4423_v53 = vcombine.low %v4054_v19, %v4066_v10  ;;  %v2972_v52 = vcombine.low %v2121_v35, %v2131_v13  ;;  %v2145_v31 = vsel %vm3565_vm4, %v2140_v0, %v4176_v59  ;;  %v3460_v59 = vld [vmem:[%s3526_s22 + $0x18] sm:$0xff]  }
  0x8c   : > { %3182 = vmatprep.mubr.msk.bf16.mxu1 %vm391_vm3, %v4422_v4  ;;  %v2150_v34 = vrot.slane %v2149_v37, 4  ;;  %v1274_v26 = vshrl.u32 %v2850_v22, 16  ;;  %v1277_v55 = vshll.u32 %v2850_v22, 16  ;;  %v2991_v19 = vrot.slane %v2983_v20, 9  ;;  %v2847_v4 = vld [vmem:[%s3526_s22 + $0x3c] sm:$0xf] }
  0x8d   : > { %v2382_v10 = vrot.slane %v2380_v6, 4  ;;  %v2383_v38 = vrot.slane %v4007_v30, 5  ;;  %v1296_v44 = vsel %vm3565_vm4, %v1291_v9, %v1295_v61  ;;  %v2164_v11 = vrot.slane %v2163_v7, 4  ;;  %v2984_v30 = vld [vmem:[%s3526_s22 + $0x24] sm:$0xe]  ;;  %v3462_v22 = vld [vmem:[%s3526_s22 + $0x30] sm:$0xff]  }
  0x8e   : > { %v2155_v39 = vsel %vm3565_vm4, %v2150_v34, %v2154_v2  ;;  %v2174_v15 = vrot.slane %v2173_v33, 4  ;;  %v2178_v41 = vrot.slane %v2176_v25, 5  ;;  %v1276_v40 = vrot.slane %v1274_v26, 4  ;;  %v3463_v20 = vld [vmem:[%s3526_s22 + $0x3c] sm:$0xff]   ;;  %v2853_v26 = vld [vmem:[%s3526_s22 + $0x54] sm:$0xf] }
  0x8f   : > { %v2973_v18 = vcombine.low %v2145_v31, %v2155_v39  ;;  %v1279_v47 = vrot.slane %v1277_v55, 5  ;;  %v2381_v37 = vsel %vm3720_vm7, %v2991_v19, %v2380_v6  ;;  %v2384_v49 = vsel %vm3720_vm7, %v2382_v10, %v2383_v38  ;;  %v2987_v38 = vld [vmem:[%s3526_s22 + $0x48] sm:$0xe] }
  0x90   : > { %v2387_v58 = vrot.slane %v4020_v14, 5  ;;  %v2179_v48 = vsel %vm3565_vm4, %v2174_v15, %v2178_v41  ;;  %v2394_v50 = vrot.slane %v4039_v8, 5  ;;  %v1253_v35 = vshll.u32 %v2847_v4, 16 }
  0x91   : > { %3265 = vmatmul.mubr.msk.bf16.gmra.mrb[4].mxu0 %vm391_vm3, %v2970_v54  ;;  %v1280_v23 = vor.u32 %v1279_v47, %v1276_v40  ;;  %v2169_v54 = vsel %vm3565_vm4, %v2164_v11, %v4209_v24  ;;  %v1259_v14 = vshll.u32 %v3823_v42, 16  ;;  %v2992_v24 = vrot.slane %v2984_v30, 9 }
  0x92   : > { %3268 = vmatprep.mubr.msk.bf16.mxu0 %vm391_vm3, %v2971_v29  ;;  %v1250_v29 = vshrl.u32 %v2847_v4, 16  ;;  %v2390_v8 = vrot.slane %v4062_v36, 5  ;;  %v3000_v0 = vcombine.low %v2381_v37, %v2384_v49  ;;  %v2389_v34 = vrot.slane %v2387_v58, 4  ;;  %v3464_v37 = vld [vmem:[%s3526_s22 + $0x48] sm:$0xff]  }
  0x93   : > { %3183 = vmatmul.mubr.msk.bf16.gmra.mrb[12].mxu1 %vm391_vm3, %v4423_v53  ;;  %v1281_v13 = vrot.slane %v1280_v23, 4  ;;  %v2993_v2 = vrot.slane %v2985_v62, 9  ;;  %v2974_v61 = vcombine.low %v2169_v54, %v2179_v48  ;;  %v2396_v6 = vrot.slane %v2394_v50, 4  ;;  %v3465_v23 = vld [vmem:[%s3526_s22 + $0x54] sm:$0xff]  }
  0x94   : > { %3188 = vmatprep.mubr.msk.bf16.mxu1 %vm391_vm3, %v3459_v1  ;;  %v1263_v1 = vshrl.u32 %v3823_v42, 16  ;;  %v2397_v42 = vrot.slane %v4069_v21, 5  ;;  %v1252_v7 = vrot.slane %v1250_v29, 4  ;;  %v1255_v33 = vrot.slane %v1253_v35, 5 }
  0x95   : > { %v1286_v9 = vsel %vm3565_vm4, %v1281_v13, %v4178_v57  ;;  %v4271_v25 = vrot.slane %v1259_v14, 5  ;;  %v2388_v53 = vsel %vm3720_vm7, %v2992_v24, %v2387_v58  ;;  %v2391_v57 = vsel %vm3720_vm7, %v2389_v34, %v2390_v8  ;;  %v2988_v24 = vld [vmem:[%s3526_s22 + $0x54] sm:$0xe]  ;;  %v4424_v8 = vld [vmem:[#allocation5_spill] sm:$0xff] }
  0x96   : > { %v1265_v36 = vrot.slane %v1263_v1, 4  ;;  %v2395_v21 = vsel %vm3720_vm7, %v2993_v2, %v2394_v50  ;;  %v2401_v31 = vrot.slane %v4080_v43, 5  ;;  %v1269_v39 = vshll.u32 %v3826_v45, 16  ;;  %v2856_v50 = vld [vmem:[%s3526_s22 + $0x60] sm:$0xf] }
  0x97   : > { %v2398_v55 = vsel %vm3720_vm7, %v2396_v6, %v2397_v42  ;;  %v1256_v19 = vor.u32 %v1255_v33, %v1252_v7  ;;  %v3001_v43 = vcombine.low %v2388_v53, %v2391_v57  ;;  %v2404_v11 = vrot.slane %v4122_v46, 5  ;;  %v4426_v33 = vld [vmem:[#allocation2_spill] sm:$0xff] }
  0x98   : > { %v1266_v10 = vor.u32 %v1265_v36, %v4271_v25  ;;  %v1298_v15 = vshrl.u32 %v2853_v26, 16  ;;  %v1301_v41 = vshll.u32 %v2853_v26, 16  ;;  %v1307_v40 = vshll.u32 %v3852_v17, 16 }
  0x99   : > { %3269 = vmatmul.mubr.msk.bf16.gmra.mrb[8].mxu0 %vm391_vm3, %v2972_v52  ;;  %v2986_v52 = vld [vmem:[%s3526_s22 + $0x3c] sm:$0xe]  ;;  %v2403_v4 = vrot.slane %v2401_v31, 4  ;;  %v1271_v47 = vrot.slane %v1269_v39, 5  ;;  %v2411_v58 = vrot.slane %v4127_v63, 5  ;;  %v2415_v63 = vrot.slane %v4112_v27, 5 }
  0x9a   : > { %3272 = vmatprep.mubr.msk.bf16.mxu0 %vm391_vm3, %v2973_v18  ;;  %v2994_v45 = vrot.slane %v2986_v52, 9  ;;  %v3002_v18 = vcombine.low %v2395_v21, %v2398_v55  ;;  %v1267_v49 = vrot.slane %v1266_v10, 4  ;;  %v1300_v46 = vrot.slane %v1298_v15, 4  ;;  %v2989_v27 = vld [vmem:[%s3526_s22 + $0x60] sm:$0xe] }
  0x9b   : > { %3189 = vmatmul.mubr.msk.bf16.vlgmr.msra.gmra.mrb[0].mxu1 %vm391_vm3, %v3460_v59  ;;  %v1311_v59 = vshrl.u32 %v3852_v17, 16  ;;  %v1303_v54 = vrot.slane %v1301_v41, 5  ;;  %v1309_v48 = vrot.slane %v1307_v40, 5  ;;  %v2405_v29 = vsel %vm3720_vm7, %v2403_v4, %v2404_v11  ;;  %v3466_v52 = vld [vmem:[%s3526_s22 + $0x60] sm:$0xff]  }
  0x9c   : > { %3295 = vmatpush3.bf16.msra.mxu1 %v3509_v3  ;;  %3192 = vmatprep.mubr.msk.bf16.mxu1 %vm391_vm3, %v3461_v51  ;;  %v4268_v3 = vcombine.low %v1286_v9, %v1296_v44  ;;  %v2408_v44 = vrot.slane %v4091_v16, 5  ;;  %v2995_v51 = vrot.slane %v2987_v38, 9  ;;  %v1257_v16 = vrot.slane %v1256_v19, 4  ;;  %v4425_v9 = vld [vmem:[#allocation3_spill] sm:$0xff] }
  0x9d   : > { %v1313_v62 = vrot.slane %v1311_v59, 4  ;;  %v2402_v17 = vsel %vm3720_vm7, %v2994_v45, %v2401_v31  ;;  %v1272_v1 = vsel %vm3565_vm4, %v1267_v49, %v1271_v47  ;;  %v1322_v34 = vshrl.u32 %v2856_v50, 16  ;;  %v2990_v47 = vld [vmem:[%s3526_s22 + $0x6c] sm:$0xe] }
  0x9e   : > { %v2410_v30 = vrot.slane %v2408_v44, 4  ;;  %v2409_v35 = vsel %vm3720_vm7, %v2995_v51, %v2408_v44  ;;  %v1262_v14 = vsel %vm3565_vm4, %v1257_v16, %v4271_v25  ;;  %v1325_v2 = vshll.u32 %v2856_v50, 16 }
  0x9f   : > { %v1335_v6 = vshrl.u32 %v4425_v9, 16  ;;  %v3003_v42 = vcombine.low %v2402_v17, %v2405_v29  ;;  %v1314_v7 = vor.u32 %v1313_v62, %v1309_v48  ;;  %v1317_v25 = vshll.u32 %v4426_v33, 16 }
  0xa0   : > { %v2412_v13 = vsel %vm3720_vm7, %v2410_v30, %v2411_v58  ;;  %v2417_v53 = vrot.slane %v2415_v63, 4  ;;  %v2418_v57 = vrot.slane %v4165_v56, 5  ;;  %v2864_v21 = vcombine.low %v1262_v14, %v1272_v1 }
  0xa1   : > { %3273 = vmatmul.mubr.msk.bf16.gmra.mrb[12].mxu0 %vm391_vm3, %v2974_v61  ;;  %v1331_v61 = vshll.u32 %v4425_v9, 16  ;;  %v3004_v36 = vcombine.low %v2409_v35, %v2412_v13  ;;  %v2997_v31 = vrot.slane %v2989_v27, 9  ;;  %v2425_v26 = vrot.slane %v4186_v28, 5 }
  0xa2   : > { %3278 = vmatprep.mubr.msk.bf16.mxu0 %vm391_vm3, %v3000_v0  ;;  %v2422_v0 = vrot.slane %v4424_v8, 5  ;;  %v1324_v55 = vrot.slane %v1322_v34, 4  ;;  %v1327_v19 = vrot.slane %v1325_v2, 5  ;;  %v1337_v38 = vrot.slane %v1335_v6, 4 }
  0xa3   : > { %3193 = vmatmul.mubr.msk.bf16.gmra.mrb[4].mxu1 %vm391_vm3, %v3462_v22  ;;  %v1304_v22 = vor.u32 %v1303_v54, %v1300_v46  ;;  %v1333_v10 = vrot.slane %v1331_v61, 5  ;;  %v1319_v45 = vrot.slane %v1317_v25, 5  ;;  %v2419_v28 = vsel %vm3720_vm7, %v2417_v53, %v2418_v57 }
  0xa4   : > { %3196 = vmatprep.mubr.msk.bf16.mxu1 %vm391_vm3, %v3463_v20  ;;  %v2996_v20 = vrot.slane %v2988_v24, 9  ;;  %v2424_v39 = vrot.slane %v2422_v0, 4  ;;  %v2423_v11 = vsel %vm3720_vm7, %v2997_v31, %v2422_v0  ;;  %v2429_v15 = vrot.slane %v4174_v12, 5 }
  0xa5   : > { %v1305_v44 = vrot.slane %v1304_v22, 4  ;;  %v1328_v40 = vor.u32 %v1327_v19, %v1324_v55  ;;  %v1338_v59 = vor.u32 %v1337_v38, %v1333_v10  ;;  %v2998_v30 = vrot.slane %v2990_v47, 9 }
  0xa6   : > { %v2416_v56 = vsel %vm3720_vm7, %v2996_v20, %v2415_v63  ;;  %v2426_v41 = vsel %vm3720_vm7, %v2424_v39, %v2425_v26  ;;  %v2431_v12 = vrot.slane %v2429_v15, 4  ;;  %v2432_v58 = vrot.slane %v4215_v60, 5 }
  0xa7   : > { %v1310_v51 = vsel %vm3565_vm4, %v1305_v44, %v1309_v48  ;;  %v3005_v16 = vcombine.low %v2416_v56, %v2419_v28  ;;  %v3006_v49 = vcombine.low %v2423_v11, %v2426_v41  ;;  %v1329_v46 = vrot.slane %v1328_v40, 4 }
  0xa8   : > { %v1339_v54 = vrot.slane %v1338_v59, 4  ;;  %v2430_v48 = vsel %vm3720_vm7, %v2998_v30, %v2429_v15  ;;  %v2433_v50 = vsel %vm3720_vm7, %v2431_v12, %v2432_v58 }
  0xa9   : > { %3279 = vmatmul.mubr.msk.bf16.vlgmr.msra.gmra.mrb[0].mxu0 %vm391_vm3, %v3001_v43  ;;  %v1315_v43 = vrot.slane %v1314_v7, 4  ;;  %v1334_v60 = vsel %vm3565_vm4, %v1329_v46, %v1333_v10  ;;  %v3007_v29 = vcombine.low %v2430_v48, %v2433_v50 }
  0xaa   : > { %3282 = vmatprep.mubr.msk.bf16.mxu0 %vm391_vm3, %v3002_v18  ;;  %v4427_v18 = vld [vmem:[#allocation4_spill] sm:$0xff] }
  0xab   : > { %3197 = vmatmul.mubr.msk.bf16.gmra.mrb[8].mxu1 %vm391_vm3, %v3464_v37  ;;  %v1341_v4 = vshll.u32 %v4427_v18, 16  ;;  %v1320_v37 = vsel %vm3565_vm4, %v1315_v43, %v1319_v45 }
  0xac   : > { %3200 = vmatprep.mubr.msk.bf16.mxu1 %vm391_vm3, %v3465_v23  ;;  %v2866_v23 = vcombine.low %v1310_v51, %v1320_v37 }
  0xad   : > { %v1343_v62 = vrot.slane %v1341_v4, 5 }
  0xaf   : > { %v1344_v17 = vsel %vm3565_vm4, %v1339_v54, %v1343_v62 }
  0xb0   : > { %v2867_v35 = vcombine.low %v1334_v60, %v1344_v17 }
  0xb1   : > { %3283 = vmatmul.mubr.msk.bf16.gmra.mrb[4].mxu0 %vm391_vm3, %v3003_v42 }
  0xb2   : > { %3286 = vmatprep.mubr.msk.bf16.mxu0 %vm391_vm3, %v3004_v36 }
  0xb3   : > { %3201 = vmatmul.mubr.msk.bf16.gmra.mrb[12].mxu1 %vm391_vm3, %v3466_v52 }
  0xb4   : > { %3214 = vmatprep.mubr.msk.bf16.mxu1 %vm391_vm3, %v2864_v21 }
  0xb9   : > { %3287 = vmatmul.mubr.msk.bf16.gmra.mrb[8].mxu0 %vm391_vm3, %v3005_v16 }
  0xba   : > { %3290 = vmatprep.mubr.msk.bf16.mxu0 %vm391_vm3, %v3006_v49 }
  0xbb   : > { %3215 = vmatmul.mubr.msk.bf16.vlgmr.msra.gmra.mrb[8].mxu1 %vm391_vm3, %v4268_v3 }
  0xbc   : > { %3218 = vmatprep.mubr.msk.bf16.mxu1 %vm391_vm3, %v2866_v23 }
  0xc1   : > { %3291 = vmatmul.mubr.msk.bf16.gmra.mrb[12].mxu0 %vm391_vm3, %v3007_v29 }
  0xc3   : > { %3219 = vmatmul.mubr.msk.bf16.gmra.mrb[12].mxu1 %vm391_vm3, %v2867_v35 }
 0x16e   : > { %v3190_v3 = vpop.f32.mrb[0].mxu1 }
 0x16f   : > { %v1050_v63 = vpop.f32.mrb[1].mxu1 }
 0x170   : > { %v3191_v14 = vpop.f32.mrb[2].mxu1 }
 0x171   : > { %v1053_v5 = vpop.f32.mrb[3].mxu1 }
 0x176   : > { %v3194_v1 = vpop.f32.mrb[4].mxu1 }
 0x177   : > { %v1066_v13 = vpop.f32.mrb[5].mxu1 }
 0x178   : > { %v3195_v24 = vpop.f32.mrb[6].mxu1 }
 0x179   : > { %v1069_v8 = vpop.f32.mrb[7].mxu1 }
 0x17c   : > { %v3280_v0 = vpop.f32.mrb[0].mxu0 }
 0x17d   : > { %v3296_v27 = vadd.f32 %v3280_v0, %v3190_v3  ;;  %v2521_v34 = vpop.f32.mrb[1].mxu0 }
 0x17e   : > { %v3297_v32 = vadd.f32 %v2521_v34, %v1050_v63  ;;  %v3281_v2 = vpop.f32.mrb[2].mxu0 }
 0x17f   : > { %v3037_v9 = vpack.c.bf16 %v3296_v27, %v3296_v27  ;;  %v3298_v61 = vadd.f32 %v3281_v2, %v3191_v14  ;;  %v2524_v6 = vpop.f32.mrb[3].mxu0 }
 0x180   : > { %v3035_v42 = vpack.c.bf16 %v3297_v32, %v3297_v32  ;;  %v3299_v22 = vadd.f32 %v2524_v6, %v1053_v5 }
 0x181   : > { %2667 = vst.msk [vmem:[%s4366_s12 + $0x8] sm:$0xf] %vm2664_vm8, %v3037_v9  ;;  %v3038_v7 = vpack.c.bf16 %v3298_v61, %v3298_v61 }
 0x182   : > { %2665 = vst.msk [vmem:[%s4366_s12] sm:$0xf] %vm2664_vm8, %v3035_v42  ;;  %v3036_v33 = vpack.c.bf16 %v3299_v22, %v3299_v22 }
 0x183   : > { %2668 = vst.msk [vmem:[%s4366_s12 + $0xc] sm:$0xf] %vm2664_vm8, %v3038_v7 }
 0x184   : > { %2666 = vst.msk [vmem:[%s4366_s12 + $0x4] sm:$0xf] %vm2664_vm8, %v3036_v33  ;;  %v3284_v25 = vpop.f32.mrb[4].mxu0 }
 0x185   : > { %v3300_v36 = vadd.f32 %v3284_v25, %v3194_v1  ;;  %v2537_v20 = vpop.f32.mrb[5].mxu0 }
 0x186   : > { %v3301_v53 = vadd.f32 %v2537_v20, %v1066_v13  ;;  %v3285_v57 = vpop.f32.mrb[6].mxu0 }
 0x187   : > { %v3041_v52 = vpack.c.bf16 %v3300_v36, %v3300_v36  ;;  %v3302_v21 = vadd.f32 %v3285_v57, %v3195_v24  ;;  %v2540_v31 = vpop.f32.mrb[7].mxu0 }
 0x188   : > { %v3039_v39 = vpack.c.bf16 %v3301_v53, %v3301_v53  ;;  %v3303_v26 = vadd.f32 %v2540_v31, %v1069_v8 }
 0x189   : > { %2671 = vst.msk [vmem:[%s4366_s12 + $0x18] sm:$0xf] %vm2664_vm8, %v3041_v52  ;;  %v3042_v55 = vpack.c.bf16 %v3302_v21, %v3302_v21 }
 0x18a   : > { %2669 = vst.msk [vmem:[%s4366_s12 + $0x10] sm:$0xf] %vm2664_vm8, %v3039_v39  ;;  %v3040_v19 = vpack.c.bf16 %v3303_v26, %v3303_v26 }
 0x18b   : > { %2672 = vst.msk [vmem:[%s4366_s12 + $0x1c] sm:$0xf] %vm2664_vm8, %v3042_v55 }
 0x18c   : > { %2670 = vst.msk [vmem:[%s4366_s12 + $0x14] sm:$0xf] %vm2664_vm8, %v3040_v19  ;;  %v3288_v10 = vpop.f32.mrb[8].mxu0 }
 0x18d   : > { %v2553_v44 = vpop.f32.mrb[9].mxu0 }
 0x18e   : > { %v3216_v38 = vpop.f32.mrb[8].mxu1  ;;  %v3289_v56 = vpop.f32.mrb[10].mxu0 }
 0x18f   : > { %v3304_v43 = vadd.f32 %v3288_v10, %v3216_v38  ;;  %v1464_v45 = vpop.f32.mrb[9].mxu1  ;;  %v2556_v15 = vpop.f32.mrb[11].mxu0 }
 0x190   : > { %v3305_v28 = vadd.f32 %v2553_v44, %v1464_v45  ;;  %v3217_v11 = vpop.f32.mrb[10].mxu1 }
 0x191   : > { %v3045_v41 = vpack.c.bf16 %v3304_v43, %v3304_v43  ;;  %v3306_v40 = vadd.f32 %v3289_v56, %v3217_v11  ;;  %v1467_v59 = vpop.f32.mrb[11].mxu1 }
 0x192   : > { %v3043_v18 = vpack.c.bf16 %v3305_v28, %v3305_v28  ;;  %v3307_v4 = vadd.f32 %v2556_v15, %v1467_v59 }
 0x193   : > { %2675 = vst.msk [vmem:[%s4366_s12 + $0x28] sm:$0xf] %vm2664_vm8, %v3045_v41  ;;  %v3046_v47 = vpack.c.bf16 %v3306_v40, %v3306_v40 }
 0x194   : > { %2673 = vst.msk [vmem:[%s4366_s12 + $0x20] sm:$0xf] %vm2664_vm8, %v3043_v18  ;;  %v3044_v51 = vpack.c.bf16 %v3307_v4, %v3307_v4  ;;  %v3292_v37 = vpop.f32.mrb[12].mxu0 }
 0x195   : > { %2676 = vst.msk [vmem:[%s4366_s12 + $0x2c] sm:$0xf] %vm2664_vm8, %v3046_v47  ;;  %v2569_v49 = vpop.f32.mrb[13].mxu0 }
 0x196   : > { %2674 = vst.msk [vmem:[%s4366_s12 + $0x24] sm:$0xf] %vm2664_vm8, %v3044_v51  ;;  %v3220_v16 = vpop.f32.mrb[12].mxu1  ;;  %v3293_v58 = vpop.f32.mrb[14].mxu0 }
 0x197   : > { %v3308_v30 = vadd.f32 %v3292_v37, %v3220_v16  ;;  %v1480_v12 = vpop.f32.mrb[13].mxu1  ;;  %v2572_v54 = vpop.f32.mrb[15].mxu0 }
 0x198   : > { %v3309_v23 = vadd.f32 %v2569_v49, %v1480_v12  ;;  %v3221_v46 = vpop.f32.mrb[14].mxu1 }
 0x199   : > { %v3049_v62 = vpack.c.bf16 %v3308_v30, %v3308_v30  ;;  %v3310_v48 = vadd.f32 %v3293_v58, %v3221_v46  ;;  %v1483_v50 = vpop.f32.mrb[15].mxu1 }
 0x19a   : > { %v3047_v60 = vpack.c.bf16 %v3309_v23, %v3309_v23  ;;  %v3311_v17 = vadd.f32 %v2572_v54, %v1483_v50 }
 0x19b   : > { %2679 = vst.msk [vmem:[%s4366_s12 + $0x38] sm:$0xf] %vm2664_vm8, %v3049_v62  ;;  %v3050_v29 = vpack.c.bf16 %v3310_v48, %v3310_v48 }
 0x19c   : > { %2677 = vst.msk [vmem:[%s4366_s12 + $0x30] sm:$0xf] %vm2664_vm8, %v3047_v60  ;;  %v3048_v35 = vpack.c.bf16 %v3311_v17, %v3311_v17 }
 0x19d   : > { %2680 = vst.msk [vmem:[%s4366_s12 + $0x3c] sm:$0xf] %vm2664_vm8, %v3050_v29 }
 0x19e   : > { %2678 = vst.msk [vmem:[%s4366_s12 + $0x34] sm:$0xf] %vm2664_vm8, %v3048_v35 }
 0x19f PF: > { %s12_s9 = sadd.s32 1, %s3474_s9  }
 0x1a0   : > { %p9_p4 = scmp.ge.s32.totalorder %s12_s9, 6  }
 0x1a2   :  { %11 = sbr.rel (!%p9_p4) target bundleno = 1 (0x1), region = 68 }

</bundles_post_ra>
